<compile_context>
chip_gen: v7x
topology: tpu7x:2x2x1
jax: 0.10.0
libtpu: 0.0.40
codegen_flags: <defaults>
</compile_context>

<pallas_src>
import numpy as np
import jax
import jax.numpy as jnp
from jax import lax
from jax.experimental import pallas as pl
from jax.experimental.pallas import tpu as pltpu

MATMUL_DTYPE = jnp.bfloat16  # MXU operand dtype; accumulation + epilogue stay f32
IN_H, IN_W, IN_C = 32, 32, 3  # implied by fc(256): 3 stride-2 convs from 32x32x3


# ----------------------------------------------------------------------------
# Host-side factorization of each conv layer into (A, D) matmul factors
# ----------------------------------------------------------------------------
def _conv_factors(w, hin, win, stride, pad):
    """w: [kh, kw, cin, cout].  Returns A [kh, Ho, Hin], D [kh, Win*Cin, Wo*Cout]
    such that for X laid out as [Hin, Win*Cin]:
        conv(X)[oh, ow*Cout + co] = sum_di ((A[di] @ X) @ D[di])[oh, ow*Cout+co].
    Zero padding in H is encoded by all-zero rows of A, in W by zero blocks of D."""
    w = np.asarray(w, np.float32)
    kh, kw, cin, cout = w.shape
    ho = (hin + 2 * pad - kh) // stride + 1
    wo = (win + 2 * pad - kw) // stride + 1
    A = np.zeros((kh, ho, hin), np.float32)
    for di in range(kh):
        for oh in range(ho):
            ih = stride * oh + di - pad
            if 0 <= ih < hin:
                A[di, oh, ih] = 1.0
    D = np.zeros((kh, win * cin, wo * cout), np.float32)
    for di in range(kh):
        for dj in range(kw):
            for ow in range(wo):
                iw = stride * ow + dj - pad
                if 0 <= iw < win:
                    D[di, iw * cin:(iw + 1) * cin, ow * cout:(ow + 1) * cout] = w[di, dj]
    return A, D, ho, wo


def _bn_rows(bn, wo, eps=1e-5):
    """Fold BN (eval mode) into a [2, Wo*Cout] f32 array: row 0 scale, row 1 bias,
    tiled to match the [H, W*C] activation layout."""
    gamma, beta, mean, var = (np.asarray(t, np.float32) for t in bn)
    scale = gamma / np.sqrt(var + eps)
    bias = beta - mean * scale
    return np.stack([np.tile(scale, wo), np.tile(bias, wo)]).astype(np.float32)


def prepare_kernel_params(p, num_classes=10):
    kp = {}

    # conv1: 32x32x3 -> 16x16x16 (3x3, s2, p1)
    A1, D1, ho1, wo1 = _conv_factors(p["conv1_w"], IN_H, IN_W, 2, 1)
    kp["a1"] = jnp.asarray(A1, MATMUL_DTYPE)
    kp["d1"] = jnp.asarray(D1, MATMUL_DTYPE)
    kp["bn1"] = jnp.asarray(_bn_rows(p["bn1"], wo1))

    # conv2_1 (3x3 s2 p1) + shortcut2 (1x1 s2 p0): same input, same stride-2 row
    # selection -> merge into one 32-channel matmul (cols 0..127 = conv2_1,
    # cols 128..255 = shortcut2).
    A21, D21, ho2, wo2 = _conv_factors(p["conv2_1_w"], ho1, wo1, 2, 1)
    Asc, Dsc, _, _ = _conv_factors(p["shortcut2_w"], ho1, wo1, 2, 0)
    assert np.array_equal(Asc[0], A21[1])  # center tap of the 3x3 == the 1x1 tap
    D2 = np.zeros((3, D21.shape[1], 2 * D21.shape[2]), np.float32)
    D2[:, :, :D21.shape[2]] = D21
    D2[1, :, D21.shape[2]:] = Dsc[0]
    kp["a2"] = jnp.asarray(A21, MATMUL_DTYPE)
    kp["d2"] = jnp.asarray(D2, MATMUL_DTYPE)
    kp["bn2m"] = jnp.asarray(
        np.concatenate([_bn_rows(p["bn2_1"], wo2), _bn_rows(p["bn2"], wo2)], axis=1))

    # conv2_2: 8x8x16 -> 8x8x16 (3x3, s1, p1)
    A22, D22, ho22, wo22 = _conv_factors(p["conv2_2_w"], ho2, wo2, 1, 1)
    kp["a22"] = jnp.asarray(A22, MATMUL_DTYPE)
    kp["d22"] = jnp.asarray(D22, MATMUL_DTYPE)
    kp["bn22"] = jnp.asarray(_bn_rows(p["bn2_2"], wo22))

    # conv3: 8x8x16 -> 4x4x16 (3x3, s2, p1)
    A3, D3, ho3, wo3 = _conv_factors(p["conv3_w"], ho22, wo22, 2, 1)
    kp["a3"] = jnp.asarray(A3, MATMUL_DTYPE)
    kp["d3"] = jnp.asarray(D3, MATMUL_DTYPE)
    kp["bn3"] = jnp.asarray(_bn_rows(p["bn3"], wo3))

    # fc: rows ordered as NHWC flatten (h*W*C + w*C + c); pad classes -> 128 lanes
    # and pre-split per H row so no in-kernel reshape is needed.
    feat = ho3 * wo3 * 16
    wfc = np.zeros((feat, 128), np.float32)
    wfc[:, :num_classes] = np.asarray(p["fc_w"], np.float32)
    kp["wfc"] = jnp.asarray(wfc.reshape(ho3, wo3 * 16, 128), MATMUL_DTYPE)
    bfc = np.zeros((1, 128), np.float32)
    bfc[0, :num_classes] = np.asarray(p["fc_b"], np.float32)
    kp["bfc"] = jnp.asarray(bfc)
    return kp


# ----------------------------------------------------------------------------
# The single fused Pallas kernel (one grid step == one batch sample)
# ----------------------------------------------------------------------------
def _conv_block(x, a_ref, d_ref, bn_ref):
    """x: [Hin, Win*Cin] f32 -> BN(conv(x)) as [Ho, Wo*Cout] f32."""
    xq = x.astype(MATMUL_DTYPE)
    acc = None
    for di in range(a_ref.shape[0]):
        rows = jnp.dot(a_ref[di], xq, preferred_element_type=jnp.float32)
        part = jnp.dot(rows.astype(MATMUL_DTYPE), d_ref[di],
                       preferred_element_type=jnp.float32)
        acc = part if acc is None else acc + part
    bn = bn_ref[...]
    return acc * bn[0:1, :] + bn[1:2, :]


def resnet4_kernel(x_ref, a1_ref, d1_ref, bn1_ref,
                   a2_ref, d2_ref, bn2m_ref,
                   a22_ref, d22_ref, bn22_ref,
                   a3_ref, d3_ref, bn3_ref,
                   wfc_ref, bfc_ref, out_ref):
    x0 = x_ref[0]                                               # [32, 96]  (H, W*C)

    # conv1 + bn1 + relu1                                       -> [16, 256]
    x1 = jnp.maximum(_conv_block(x0, a1_ref, d1_ref, bn1_ref), 0.0)

    # merged {conv2_1 + bn2_1 | shortcut2 + bn2}                -> [8, 256]
    y2 = _conv_block(x1, a2_ref, d2_ref, bn2m_ref)
    x21 = jnp.maximum(y2[:, :128], 0.0)                         # relu2_1 branch
    residual2 = y2[:, 128:]                                     # bn2(shortcut2(x1))

    # conv2_2 + bn2_2, add residual, relu2                      -> [8, 128]
    x22 = jnp.maximum(_conv_block(x21, a22_ref, d22_ref, bn22_ref) + residual2, 0.0)

    # conv3 + bn3 (no relu)                                     -> [4, 64]
    x3 = _conv_block(x22, a3_ref, d3_ref, bn3_ref)

    # fc on the NHWC flatten: sum over H rows of [1, W*C] @ [W*C, 128]
    acc = bfc_ref[...]                                          # [1, 128] f32
    for h in range(wfc_ref.shape[0]):
        acc = acc + jnp.dot(x3[h:h + 1, :].astype(MATMUL_DTYPE), wfc_ref[h],
                            preferred_element_type=jnp.float32)
    out_ref[0] = acc


def _const_index_map(ndim):
    return lambda b: (0,) * ndim


def resnet4_forward(x_nchw, kp, num_classes=10):
    x = jnp.transpose(x_nchw, (0, 2, 3, 1)).astype(jnp.float32)   # NHWC
    N, H, W, C = x.shape
    x2d = x.reshape(N, H, W * C)                                  # [N, 32, 96]

    weights = [kp["a1"], kp["d1"], kp["bn1"],
               kp["a2"], kp["d2"], kp["bn2m"],
               kp["a22"], kp["d22"], kp["bn22"],
               kp["a3"], kp["d3"], kp["bn3"],
               kp["wfc"], kp["bfc"]]

    in_specs = [pl.BlockSpec((1, H, W * C), lambda b: (b, 0, 0))]
    in_specs += [pl.BlockSpec(w.shape, _const_index_map(w.ndim)) for w in weights]

    out = pl.pallas_call(
        resnet4_kernel,
        out_shape=jax.ShapeDtypeStruct((N, 1, 128), jnp.float32),
        grid=(N,),
        in_specs=in_specs,
        out_specs=pl.BlockSpec((1, 1, 128), lambda b: (b, 0, 0)),
        compiler_params=pltpu.CompilerParams(
            dimension_semantics=("parallel",)),
    )(x2d, *weights)
    return out.reshape(N, 128)[:, :num_classes]


# ----------------------------------------------------------------------------
# Deterministic parameter construction (shapes from ResNet4.__init__).
# Conv weights stored as [kh, kw, cin, cout] (permutation of PyTorch OIHW).
# ----------------------------------------------------------------------------
def init_params(key, num_classes=10):
    keys = jax.random.split(key, 32)
    k = iter(keys)

    def conv_w(kh, kw, cin, cout):
        fan_in = kh * kw * cin
        return jax.random.normal(next(k), (kh, kw, cin, cout), jnp.float32) * (
            1.0 / jnp.sqrt(fan_in))

    def bn_params(c):
        gamma = 1.0 + 0.1 * jax.random.normal(next(k), (c,), jnp.float32)
        beta = 0.1 * jax.random.normal(next(k), (c,), jnp.float32)
        mean = 0.1 * jax.random.normal(next(k), (c,), jnp.float32)
        var = 0.5 + jax.random.uniform(next(k), (c,), jnp.float32)
        return gamma, beta, mean, var

    p = {}
    p["conv1_w"] = conv_w(3, 3, 3, 16)
    p["bn1"] = bn_params(16)
    p["conv2_1_w"] = conv_w(3, 3, 16, 16)
    p["bn2_1"] = bn_params(16)
    p["conv2_2_w"] = conv_w(3, 3, 16, 16)
    p["bn2_2"] = bn_params(16)
    p["shortcut2_w"] = conv_w(1, 1, 16, 16)
    p["bn2"] = bn_params(16)
    p["conv3_w"] = conv_w(3, 3, 16, 16)
    p["bn3"] = bn_params(16)
    p["fc_w"] = jax.random.normal(next(k), (256, num_classes), jnp.float32) * (
        1.0 / jnp.sqrt(256.0))
    p["fc_b"] = 0.1 * jax.random.normal(next(k), (num_classes,), jnp.float32)
    return p


# ----------------------------------------------------------------------------
# Pure-JAX reference (eval-mode BN), for a correctness check
# ----------------------------------------------------------------------------
def resnet4_reference(x_nchw, p, eps=1e-5):
    def conv(x, w, stride, pad):
        return lax.conv_general_dilated(
            x, jnp.asarray(w, jnp.float32), (stride, stride),
            ((pad, pad), (pad, pad)),
            dimension_numbers=("NHWC", "HWIO", "NHWC"))

    def bn(x, params):
        gamma, beta, mean, var = params
        return (x - mean) / jnp.sqrt(var + eps) * gamma + beta

    x = jnp.transpose(x_nchw, (0, 2, 3, 1)).astype(jnp.float32)
    x = jax.nn.relu(bn(conv(x, p["conv1_w"], 2, 1), p["bn1"]))
    residual2 = bn(conv(x, p["shortcut2_w"], 2, 0), p["bn2"])
    x = jax.nn.relu(bn(conv(x, p["conv2_1_w"], 2, 1), p["bn2_1"]))
    x = bn(conv(x, p["conv2_2_w"], 1, 1), p["bn2_2"])
    x = jax.nn.relu(x + residual2)
    x = bn(conv(x, p["conv3_w"], 2, 1), p["bn3"])
    x = x.reshape(x.shape[0], -1)          # NHWC flatten == permute(0,2,3,1).view
    return x @ p["fc_w"] + p["fc_b"]


if __name__ == "__main__":
    key = jax.random.PRNGKey(0)
    k_param, k_x = jax.random.split(key)

    # 32x32x3 input implied by the module (fc expects 256 = 4*4*16 features).
    x = jax.random.normal(k_x, (2, 3, 32, 32), jnp.float32)   # NCHW like PyTorch
    params = init_params(k_param, num_classes=10)
    kparams = prepare_kernel_params(params, num_classes=10)   # host-side, one time

    out = jax.block_until_ready(jax.jit(resnet4_forward)(x, kparams))
    assert out.shape == (2, 10), out.shape

    # Correctness vs pure-JAX reference (bf16 MXU operands -> small rounding diffs).
    ref = jax.block_until_ready(jax.jit(resnet4_reference)(x, params))
    max_err = float(jnp.max(jnp.abs(out - ref)))
    assert max_err < 0.25, f"max abs err {max_err}"

    print("KERNEL_OK")
</pallas_src>

<mosaic_0001>
module attributes {stable_mosaic.version = 11 : i64} {
  func.func @resnet4_kernel(%arg0: i32, %arg1: memref<1x32x96xf32, #tpu.memory_space<vmem>>, %arg2: memref<3x16x32xbf16, #tpu.memory_space<vmem>>, %arg3: memref<3x96x256xbf16, #tpu.memory_space<vmem>>, %arg4: memref<2x256xf32, #tpu.memory_space<vmem>>, %arg5: memref<3x8x16xbf16, #tpu.memory_space<vmem>>, %arg6: memref<3x256x256xbf16, #tpu.memory_space<vmem>>, %arg7: memref<2x256xf32, #tpu.memory_space<vmem>>, %arg8: memref<3x8x8xbf16, #tpu.memory_space<vmem>>, %arg9: memref<3x128x128xbf16, #tpu.memory_space<vmem>>, %arg10: memref<2x128xf32, #tpu.memory_space<vmem>>, %arg11: memref<3x4x8xbf16, #tpu.memory_space<vmem>>, %arg12: memref<3x128x64xbf16, #tpu.memory_space<vmem>>, %arg13: memref<2x64xf32, #tpu.memory_space<vmem>>, %arg14: memref<4x64x128xbf16, #tpu.memory_space<vmem>>, %arg15: memref<1x128xf32, #tpu.memory_space<vmem>>, %arg16: memref<1x1x128xf32, #tpu.memory_space<vmem>>) attributes {dimension_semantics = [#tpu.dimension_semantics<parallel>], iteration_bounds = array<i64: 2>, scalar_prefetch = 0 : i64, scratch_operands = 0 : i64, tpu.core_type = #tpu.core_type<tc>, window_params = [{transform_indices = @transform_0, window_bounds = array<i64: 1, 32, 96>}, {pipeline_mode = #tpu.pipeline_mode<synchronous>, transform_indices = @transform_1, window_bounds = array<i64: 3, 16, 32>}, {pipeline_mode = #tpu.pipeline_mode<synchronous>, transform_indices = @transform_2, window_bounds = array<i64: 3, 96, 256>}, {pipeline_mode = #tpu.pipeline_mode<synchronous>, transform_indices = @transform_3, window_bounds = array<i64: 2, 256>}, {pipeline_mode = #tpu.pipeline_mode<synchronous>, transform_indices = @transform_4, window_bounds = array<i64: 3, 8, 16>}, {pipeline_mode = #tpu.pipeline_mode<synchronous>, transform_indices = @transform_5, window_bounds = array<i64: 3, 256, 256>}, {pipeline_mode = #tpu.pipeline_mode<synchronous>, transform_indices = @transform_6, window_bounds = array<i64: 2, 256>}, {pipeline_mode = #tpu.pipeline_mode<synchronous>, transform_indices = @transform_7, window_bounds = array<i64: 3, 8, 8>}, {pipeline_mode = #tpu.pipeline_mode<synchronous>, transform_indices = @transform_8, window_bounds = array<i64: 3, 128, 128>}, {pipeline_mode = #tpu.pipeline_mode<synchronous>, transform_indices = @transform_9, window_bounds = array<i64: 2, 128>}, {pipeline_mode = #tpu.pipeline_mode<synchronous>, transform_indices = @transform_10, window_bounds = array<i64: 3, 4, 8>}, {pipeline_mode = #tpu.pipeline_mode<synchronous>, transform_indices = @transform_11, window_bounds = array<i64: 3, 128, 64>}, {pipeline_mode = #tpu.pipeline_mode<synchronous>, transform_indices = @transform_12, window_bounds = array<i64: 2, 64>}, {pipeline_mode = #tpu.pipeline_mode<synchronous>, transform_indices = @transform_13, window_bounds = array<i64: 4, 64, 128>}, {pipeline_mode = #tpu.pipeline_mode<synchronous>, transform_indices = @transform_14, window_bounds = array<i64: 1, 128>}, {transform_indices = @transform_15, window_bounds = array<i64: 1, 1, 128>}]} {
    %c0 = arith.constant 0 : index
    %c0_0 = arith.constant 0 : index
    %c0_1 = arith.constant 0 : index
    %0 = vector.load %arg1[%c0, %c0_0, %c0_1] : memref<1x32x96xf32, #tpu.memory_space<vmem>>, vector<1x32x96xf32>
    %1 = vector.shape_cast %0 : vector<1x32x96xf32> to vector<32x96xf32>
    %2 = arith.truncf %1 : vector<32x96xf32> to vector<32x96xbf16>
    %c0_2 = arith.constant 0 : index
    %c0_3 = arith.constant 0 : index
    %c0_4 = arith.constant 0 : index
    %3 = vector.load %arg2[%c0_2, %c0_3, %c0_4] : memref<3x16x32xbf16, #tpu.memory_space<vmem>>, vector<1x16x32xbf16>
    %4 = vector.shape_cast %3 : vector<1x16x32xbf16> to vector<16x32xbf16>
    %cst = arith.constant dense<0.000000e+00> : vector<16x96xf32>
    %5 = tpu.matmul %4, %2, %cst {dimension_numbers = #tpu.dot_dimension_numbers<[1], [0], [0], [1], [0, 0, 1, 1], [], []>} : vector<16x32xbf16>, vector<32x96xbf16>, vector<16x96xf32> -> vector<16x96xf32>
    %6 = arith.truncf %5 : vector<16x96xf32> to vector<16x96xbf16>
    %c0_5 = arith.constant 0 : index
    %c0_6 = arith.constant 0 : index
    %c0_7 = arith.constant 0 : index
    %7 = vector.load %arg3[%c0_5, %c0_6, %c0_7] : memref<3x96x256xbf16, #tpu.memory_space<vmem>>, vector<1x96x256xbf16>
    %8 = vector.shape_cast %7 : vector<1x96x256xbf16> to vector<96x256xbf16>
    %cst_8 = arith.constant dense<0.000000e+00> : vector<16x256xf32>
    %9 = tpu.matmul %6, %8, %cst_8 {dimension_numbers = #tpu.dot_dimension_numbers<[1], [0], [0], [1], [0, 0, 1, 1], [], []>} : vector<16x96xbf16>, vector<96x256xbf16>, vector<16x256xf32> -> vector<16x256xf32>
    %c1 = arith.constant 1 : index
    %c0_9 = arith.constant 0 : index
    %c0_10 = arith.constant 0 : index
    %10 = vector.load %arg2[%c1, %c0_9, %c0_10] : memref<3x16x32xbf16, #tpu.memory_space<vmem>>, vector<1x16x32xbf16>
    %11 = vector.shape_cast %10 : vector<1x16x32xbf16> to vector<16x32xbf16>
    %cst_11 = arith.constant dense<0.000000e+00> : vector<16x96xf32>
    %12 = tpu.matmul %11, %2, %cst_11 {dimension_numbers = #tpu.dot_dimension_numbers<[1], [0], [0], [1], [0, 0, 1, 1], [], []>} : vector<16x32xbf16>, vector<32x96xbf16>, vector<16x96xf32> -> vector<16x96xf32>
    %13 = arith.truncf %12 : vector<16x96xf32> to vector<16x96xbf16>
    %c1_12 = arith.constant 1 : index
    %c0_13 = arith.constant 0 : index
    %c0_14 = arith.constant 0 : index
    %14 = vector.load %arg3[%c1_12, %c0_13, %c0_14] : memref<3x96x256xbf16, #tpu.memory_space<vmem>>, vector<1x96x256xbf16>
    %15 = vector.shape_cast %14 : vector<1x96x256xbf16> to vector<96x256xbf16>
    %cst_15 = arith.constant dense<0.000000e+00> : vector<16x256xf32>
    %16 = tpu.matmul %13, %15, %cst_15 {dimension_numbers = #tpu.dot_dimension_numbers<[1], [0], [0], [1], [0, 0, 1, 1], [], []>} : vector<16x96xbf16>, vector<96x256xbf16>, vector<16x256xf32> -> vector<16x256xf32>
    %17 = arith.addf %9, %16 : vector<16x256xf32>
    %c2 = arith.constant 2 : index
    %c0_16 = arith.constant 0 : index
    %c0_17 = arith.constant 0 : index
    %18 = vector.load %arg2[%c2, %c0_16, %c0_17] : memref<3x16x32xbf16, #tpu.memory_space<vmem>>, vector<1x16x32xbf16>
    %19 = vector.shape_cast %18 : vector<1x16x32xbf16> to vector<16x32xbf16>
    %cst_18 = arith.constant dense<0.000000e+00> : vector<16x96xf32>
    %20 = tpu.matmul %19, %2, %cst_18 {dimension_numbers = #tpu.dot_dimension_numbers<[1], [0], [0], [1], [0, 0, 1, 1], [], []>} : vector<16x32xbf16>, vector<32x96xbf16>, vector<16x96xf32> -> vector<16x96xf32>
    %21 = arith.truncf %20 : vector<16x96xf32> to vector<16x96xbf16>
    %c2_19 = arith.constant 2 : index
    %c0_20 = arith.constant 0 : index
    %c0_21 = arith.constant 0 : index
    %22 = vector.load %arg3[%c2_19, %c0_20, %c0_21] : memref<3x96x256xbf16, #tpu.memory_space<vmem>>, vector<1x96x256xbf16>
    %23 = vector.shape_cast %22 : vector<1x96x256xbf16> to vector<96x256xbf16>
    %cst_22 = arith.constant dense<0.000000e+00> : vector<16x256xf32>
    %24 = tpu.matmul %21, %23, %cst_22 {dimension_numbers = #tpu.dot_dimension_numbers<[1], [0], [0], [1], [0, 0, 1, 1], [], []>} : vector<16x96xbf16>, vector<96x256xbf16>, vector<16x256xf32> -> vector<16x256xf32>
    %25 = arith.addf %17, %24 : vector<16x256xf32>
    %c0_23 = arith.constant 0 : index
    %c0_24 = arith.constant 0 : index
    %26 = vector.load %arg4[%c0_23, %c0_24] : memref<2x256xf32, #tpu.memory_space<vmem>>, vector<2x256xf32>
    %27 = vector.extract_strided_slice %26 {offsets = [0, 0], sizes = [1, 256], strides = [1, 1]} : vector<2x256xf32> to vector<1x256xf32>
    %28 = vector.broadcast %27 : vector<1x256xf32> to vector<16x256xf32>
    %29 = arith.mulf %25, %28 : vector<16x256xf32>
    %30 = vector.extract_strided_slice %26 {offsets = [1, 0], sizes = [1, 256], strides = [1, 1]} : vector<2x256xf32> to vector<1x256xf32>
    %31 = vector.broadcast %30 : vector<1x256xf32> to vector<16x256xf32>
    %32 = arith.addf %29, %31 : vector<16x256xf32>
    %cst_25 = arith.constant 0.000000e+00 : f32
    %33 = vector.broadcast %cst_25 : f32 to vector<16x256xf32>
    %34 = arith.maximumf %32, %33 : vector<16x256xf32>
    %35 = arith.truncf %34 : vector<16x256xf32> to vector<16x256xbf16>
    %c0_26 = arith.constant 0 : index
    %c0_27 = arith.constant 0 : index
    %c0_28 = arith.constant 0 : index
    %36 = vector.load %arg5[%c0_26, %c0_27, %c0_28] : memref<3x8x16xbf16, #tpu.memory_space<vmem>>, vector<1x8x16xbf16>
    %37 = vector.shape_cast %36 : vector<1x8x16xbf16> to vector<8x16xbf16>
    %cst_29 = arith.constant dense<0.000000e+00> : vector<8x256xf32>
    %38 = tpu.matmul %37, %35, %cst_29 {dimension_numbers = #tpu.dot_dimension_numbers<[1], [0], [0], [1], [0, 0, 1, 1], [], []>} : vector<8x16xbf16>, vector<16x256xbf16>, vector<8x256xf32> -> vector<8x256xf32>
    %39 = arith.truncf %38 : vector<8x256xf32> to vector<8x256xbf16>
    %c0_30 = arith.constant 0 : index
    %c0_31 = arith.constant 0 : index
    %c0_32 = arith.constant 0 : index
    %40 = vector.load %arg6[%c0_30, %c0_31, %c0_32] : memref<3x256x256xbf16, #tpu.memory_space<vmem>>, vector<1x256x256xbf16>
    %41 = vector.shape_cast %40 : vector<1x256x256xbf16> to vector<256x256xbf16>
    %cst_33 = arith.constant dense<0.000000e+00> : vector<8x256xf32>
    %42 = tpu.matmul %39, %41, %cst_33 {dimension_numbers = #tpu.dot_dimension_numbers<[1], [0], [0], [1], [0, 0, 1, 1], [], []>} : vector<8x256xbf16>, vector<256x256xbf16>, vector<8x256xf32> -> vector<8x256xf32>
    %c1_34 = arith.constant 1 : index
    %c0_35 = arith.constant 0 : index
    %c0_36 = arith.constant 0 : index
    %43 = vector.load %arg5[%c1_34, %c0_35, %c0_36] : memref<3x8x16xbf16, #tpu.memory_space<vmem>>, vector<1x8x16xbf16>
    %44 = vector.shape_cast %43 : vector<1x8x16xbf16> to vector<8x16xbf16>
    %cst_37 = arith.constant dense<0.000000e+00> : vector<8x256xf32>
    %45 = tpu.matmul %44, %35, %cst_37 {dimension_numbers = #tpu.dot_dimension_numbers<[1], [0], [0], [1], [0, 0, 1, 1], [], []>} : vector<8x16xbf16>, vector<16x256xbf16>, vector<8x256xf32> -> vector<8x256xf32>
    %46 = arith.truncf %45 : vector<8x256xf32> to vector<8x256xbf16>
    %c1_38 = arith.constant 1 : index
    %c0_39 = arith.constant 0 : index
    %c0_40 = arith.constant 0 : index
    %47 = vector.load %arg6[%c1_38, %c0_39, %c0_40] : memref<3x256x256xbf16, #tpu.memory_space<vmem>>, vector<1x256x256xbf16>
    %48 = vector.shape_cast %47 : vector<1x256x256xbf16> to vector<256x256xbf16>
    %cst_41 = arith.constant dense<0.000000e+00> : vector<8x256xf32>
    %49 = tpu.matmul %46, %48, %cst_41 {dimension_numbers = #tpu.dot_dimension_numbers<[1], [0], [0], [1], [0, 0, 1, 1], [], []>} : vector<8x256xbf16>, vector<256x256xbf16>, vector<8x256xf32> -> vector<8x256xf32>
    %50 = arith.addf %42, %49 : vector<8x256xf32>
    %c2_42 = arith.constant 2 : index
    %c0_43 = arith.constant 0 : index
    %c0_44 = arith.constant 0 : index
    %51 = vector.load %arg5[%c2_42, %c0_43, %c0_44] : memref<3x8x16xbf16, #tpu.memory_space<vmem>>, vector<1x8x16xbf16>
    %52 = vector.shape_cast %51 : vector<1x8x16xbf16> to vector<8x16xbf16>
    %cst_45 = arith.constant dense<0.000000e+00> : vector<8x256xf32>
    %53 = tpu.matmul %52, %35, %cst_45 {dimension_numbers = #tpu.dot_dimension_numbers<[1], [0], [0], [1], [0, 0, 1, 1], [], []>} : vector<8x16xbf16>, vector<16x256xbf16>, vector<8x256xf32> -> vector<8x256xf32>
    %54 = arith.truncf %53 : vector<8x256xf32> to vector<8x256xbf16>
    %c2_46 = arith.constant 2 : index
    %c0_47 = arith.constant 0 : index
    %c0_48 = arith.constant 0 : index
    %55 = vector.load %arg6[%c2_46, %c0_47, %c0_48] : memref<3x256x256xbf16, #tpu.memory_space<vmem>>, vector<1x256x256xbf16>
    %56 = vector.shape_cast %55 : vector<1x256x256xbf16> to vector<256x256xbf16>
    %cst_49 = arith.constant dense<0.000000e+00> : vector<8x256xf32>
    %57 = tpu.matmul %54, %56, %cst_49 {dimension_numbers = #tpu.dot_dimension_numbers<[1], [0], [0], [1], [0, 0, 1, 1], [], []>} : vector<8x256xbf16>, vector<256x256xbf16>, vector<8x256xf32> -> vector<8x256xf32>
    %58 = arith.addf %50, %57 : vector<8x256xf32>
    %c0_50 = arith.constant 0 : index
    %c0_51 = arith.constant 0 : index
    %59 = vector.load %arg7[%c0_50, %c0_51] : memref<2x256xf32, #tpu.memory_space<vmem>>, vector<2x256xf32>
    %60 = vector.extract_strided_slice %59 {offsets = [0, 0], sizes = [1, 256], strides = [1, 1]} : vector<2x256xf32> to vector<1x256xf32>
    %61 = vector.broadcast %60 : vector<1x256xf32> to vector<8x256xf32>
    %62 = arith.mulf %58, %61 : vector<8x256xf32>
    %63 = vector.extract_strided_slice %59 {offsets = [1, 0], sizes = [1, 256], strides = [1, 1]} : vector<2x256xf32> to vector<1x256xf32>
    %64 = vector.broadcast %63 : vector<1x256xf32> to vector<8x256xf32>
    %65 = arith.addf %62, %64 : vector<8x256xf32>
    %66 = vector.extract_strided_slice %65 {offsets = [0, 0], sizes = [8, 128], strides = [1, 1]} : vector<8x256xf32> to vector<8x128xf32>
    %cst_52 = arith.constant 0.000000e+00 : f32
    %67 = vector.broadcast %cst_52 : f32 to vector<8x128xf32>
    %68 = arith.maximumf %66, %67 : vector<8x128xf32>
    %69 = vector.extract_strided_slice %65 {offsets = [0, 128], sizes = [8, 128], strides = [1, 1]} : vector<8x256xf32> to vector<8x128xf32>
    %70 = arith.truncf %68 : vector<8x128xf32> to vector<8x128xbf16>
    %c0_53 = arith.constant 0 : index
    %c0_54 = arith.constant 0 : index
    %c0_55 = arith.constant 0 : index
    %71 = vector.load %arg8[%c0_53, %c0_54, %c0_55] : memref<3x8x8xbf16, #tpu.memory_space<vmem>>, vector<1x8x8xbf16>
    %72 = vector.shape_cast %71 : vector<1x8x8xbf16> to vector<8x8xbf16>
    %cst_56 = arith.constant dense<0.000000e+00> : vector<8x128xf32>
    %73 = tpu.matmul %72, %70, %cst_56 {dimension_numbers = #tpu.dot_dimension_numbers<[1], [0], [0], [1], [0, 0, 1, 1], [], []>} : vector<8x8xbf16>, vector<8x128xbf16>, vector<8x128xf32> -> vector<8x128xf32>
    %74 = arith.truncf %73 : vector<8x128xf32> to vector<8x128xbf16>
    %c0_57 = arith.constant 0 : index
    %c0_58 = arith.constant 0 : index
    %c0_59 = arith.constant 0 : index
    %75 = vector.load %arg9[%c0_57, %c0_58, %c0_59] : memref<3x128x128xbf16, #tpu.memory_space<vmem>>, vector<1x128x128xbf16>
    %76 = vector.shape_cast %75 : vector<1x128x128xbf16> to vector<128x128xbf16>
    %cst_60 = arith.constant dense<0.000000e+00> : vector<8x128xf32>
    %77 = tpu.matmul %74, %76, %cst_60 {dimension_numbers = #tpu.dot_dimension_numbers<[1], [0], [0], [1], [0, 0, 1, 1], [], []>} : vector<8x128xbf16>, vector<128x128xbf16>, vector<8x128xf32> -> vector<8x128xf32>
    %c1_61 = arith.constant 1 : index
    %c0_62 = arith.constant 0 : index
    %c0_63 = arith.constant 0 : index
    %78 = vector.load %arg8[%c1_61, %c0_62, %c0_63] : memref<3x8x8xbf16, #tpu.memory_space<vmem>>, vector<1x8x8xbf16>
    %79 = vector.shape_cast %78 : vector<1x8x8xbf16> to vector<8x8xbf16>
    %cst_64 = arith.constant dense<0.000000e+00> : vector<8x128xf32>
    %80 = tpu.matmul %79, %70, %cst_64 {dimension_numbers = #tpu.dot_dimension_numbers<[1], [0], [0], [1], [0, 0, 1, 1], [], []>} : vector<8x8xbf16>, vector<8x128xbf16>, vector<8x128xf32> -> vector<8x128xf32>
    %81 = arith.truncf %80 : vector<8x128xf32> to vector<8x128xbf16>
    %c1_65 = arith.constant 1 : index
    %c0_66 = arith.constant 0 : index
    %c0_67 = arith.constant 0 : index
    %82 = vector.load %arg9[%c1_65, %c0_66, %c0_67] : memref<3x128x128xbf16, #tpu.memory_space<vmem>>, vector<1x128x128xbf16>
    %83 = vector.shape_cast %82 : vector<1x128x128xbf16> to vector<128x128xbf16>
    %cst_68 = arith.constant dense<0.000000e+00> : vector<8x128xf32>
    %84 = tpu.matmul %81, %83, %cst_68 {dimension_numbers = #tpu.dot_dimension_numbers<[1], [0], [0], [1], [0, 0, 1, 1], [], []>} : vector<8x128xbf16>, vector<128x128xbf16>, vector<8x128xf32> -> vector<8x128xf32>
    %85 = arith.addf %77, %84 : vector<8x128xf32>
    %c2_69 = arith.constant 2 : index
    %c0_70 = arith.constant 0 : index
    %c0_71 = arith.constant 0 : index
    %86 = vector.load %arg8[%c2_69, %c0_70, %c0_71] : memref<3x8x8xbf16, #tpu.memory_space<vmem>>, vector<1x8x8xbf16>
    %87 = vector.shape_cast %86 : vector<1x8x8xbf16> to vector<8x8xbf16>
    %cst_72 = arith.constant dense<0.000000e+00> : vector<8x128xf32>
    %88 = tpu.matmul %87, %70, %cst_72 {dimension_numbers = #tpu.dot_dimension_numbers<[1], [0], [0], [1], [0, 0, 1, 1], [], []>} : vector<8x8xbf16>, vector<8x128xbf16>, vector<8x128xf32> -> vector<8x128xf32>
    %89 = arith.truncf %88 : vector<8x128xf32> to vector<8x128xbf16>
    %c2_73 = arith.constant 2 : index
    %c0_74 = arith.constant 0 : index
    %c0_75 = arith.constant 0 : index
    %90 = vector.load %arg9[%c2_73, %c0_74, %c0_75] : memref<3x128x128xbf16, #tpu.memory_space<vmem>>, vector<1x128x128xbf16>
    %91 = vector.shape_cast %90 : vector<1x128x128xbf16> to vector<128x128xbf16>
    %cst_76 = arith.constant dense<0.000000e+00> : vector<8x128xf32>
    %92 = tpu.matmul %89, %91, %cst_76 {dimension_numbers = #tpu.dot_dimension_numbers<[1], [0], [0], [1], [0, 0, 1, 1], [], []>} : vector<8x128xbf16>, vector<128x128xbf16>, vector<8x128xf32> -> vector<8x128xf32>
    %93 = arith.addf %85, %92 : vector<8x128xf32>
    %c0_77 = arith.constant 0 : index
    %c0_78 = arith.constant 0 : index
    %94 = vector.load %arg10[%c0_77, %c0_78] : memref<2x128xf32, #tpu.memory_space<vmem>>, vector<2x128xf32>
    %95 = vector.extract_strided_slice %94 {offsets = [0, 0], sizes = [1, 128], strides = [1, 1]} : vector<2x128xf32> to vector<1x128xf32>
    %96 = vector.broadcast %95 : vector<1x128xf32> to vector<8x128xf32>
    %97 = arith.mulf %93, %96 : vector<8x128xf32>
    %98 = vector.extract_strided_slice %94 {offsets = [1, 0], sizes = [1, 128], strides = [1, 1]} : vector<2x128xf32> to vector<1x128xf32>
    %99 = vector.broadcast %98 : vector<1x128xf32> to vector<8x128xf32>
    %100 = arith.addf %97, %99 : vector<8x128xf32>
    %101 = arith.addf %100, %69 : vector<8x128xf32>
    %cst_79 = arith.constant 0.000000e+00 : f32
    %102 = vector.broadcast %cst_79 : f32 to vector<8x128xf32>
    %103 = arith.maximumf %101, %102 : vector<8x128xf32>
    %104 = arith.truncf %103 : vector<8x128xf32> to vector<8x128xbf16>
    %c0_80 = arith.constant 0 : index
    %c0_81 = arith.constant 0 : index
    %c0_82 = arith.constant 0 : index
    %105 = vector.load %arg11[%c0_80, %c0_81, %c0_82] : memref<3x4x8xbf16, #tpu.memory_space<vmem>>, vector<1x4x8xbf16>
    %106 = vector.shape_cast %105 : vector<1x4x8xbf16> to vector<4x8xbf16>
    %cst_83 = arith.constant dense<0.000000e+00> : vector<4x128xf32>
    %107 = tpu.matmul %106, %104, %cst_83 {dimension_numbers = #tpu.dot_dimension_numbers<[1], [0], [0], [1], [0, 0, 1, 1], [], []>} : vector<4x8xbf16>, vector<8x128xbf16>, vector<4x128xf32> -> vector<4x128xf32>
    %108 = arith.truncf %107 : vector<4x128xf32> to vector<4x128xbf16>
    %c0_84 = arith.constant 0 : index
    %c0_85 = arith.constant 0 : index
    %c0_86 = arith.constant 0 : index
    %109 = vector.load %arg12[%c0_84, %c0_85, %c0_86] : memref<3x128x64xbf16, #tpu.memory_space<vmem>>, vector<1x128x64xbf16>
    %110 = vector.shape_cast %109 : vector<1x128x64xbf16> to vector<128x64xbf16>
    %cst_87 = arith.constant dense<0.000000e+00> : vector<4x64xf32>
    %111 = tpu.matmul %108, %110, %cst_87 {dimension_numbers = #tpu.dot_dimension_numbers<[1], [0], [0], [1], [0, 0, 1, 1], [], []>} : vector<4x128xbf16>, vector<128x64xbf16>, vector<4x64xf32> -> vector<4x64xf32>
    %c1_88 = arith.constant 1 : index
    %c0_89 = arith.constant 0 : index
    %c0_90 = arith.constant 0 : index
    %112 = vector.load %arg11[%c1_88, %c0_89, %c0_90] : memref<3x4x8xbf16, #tpu.memory_space<vmem>>, vector<1x4x8xbf16>
    %113 = vector.shape_cast %112 : vector<1x4x8xbf16> to vector<4x8xbf16>
    %cst_91 = arith.constant dense<0.000000e+00> : vector<4x128xf32>
    %114 = tpu.matmul %113, %104, %cst_91 {dimension_numbers = #tpu.dot_dimension_numbers<[1], [0], [0], [1], [0, 0, 1, 1], [], []>} : vector<4x8xbf16>, vector<8x128xbf16>, vector<4x128xf32> -> vector<4x128xf32>
    %115 = arith.truncf %114 : vector<4x128xf32> to vector<4x128xbf16>
    %c1_92 = arith.constant 1 : index
    %c0_93 = arith.constant 0 : index
    %c0_94 = arith.constant 0 : index
    %116 = vector.load %arg12[%c1_92, %c0_93, %c0_94] : memref<3x128x64xbf16, #tpu.memory_space<vmem>>, vector<1x128x64xbf16>
    %117 = vector.shape_cast %116 : vector<1x128x64xbf16> to vector<128x64xbf16>
    %cst_95 = arith.constant dense<0.000000e+00> : vector<4x64xf32>
    %118 = tpu.matmul %115, %117, %cst_95 {dimension_numbers = #tpu.dot_dimension_numbers<[1], [0], [0], [1], [0, 0, 1, 1], [], []>} : vector<4x128xbf16>, vector<128x64xbf16>, vector<4x64xf32> -> vector<4x64xf32>
    %119 = arith.addf %111, %118 : vector<4x64xf32>
    %c2_96 = arith.constant 2 : index
    %c0_97 = arith.constant 0 : index
    %c0_98 = arith.constant 0 : index
    %120 = vector.load %arg11[%c2_96, %c0_97, %c0_98] : memref<3x4x8xbf16, #tpu.memory_space<vmem>>, vector<1x4x8xbf16>
    %121 = vector.shape_cast %120 : vector<1x4x8xbf16> to vector<4x8xbf16>
    %cst_99 = arith.constant dense<0.000000e+00> : vector<4x128xf32>
    %122 = tpu.matmul %121, %104, %cst_99 {dimension_numbers = #tpu.dot_dimension_numbers<[1], [0], [0], [1], [0, 0, 1, 1], [], []>} : vector<4x8xbf16>, vector<8x128xbf16>, vector<4x128xf32> -> vector<4x128xf32>
    %123 = arith.truncf %122 : vector<4x128xf32> to vector<4x128xbf16>
    %c2_100 = arith.constant 2 : index
    %c0_101 = arith.constant 0 : index
    %c0_102 = arith.constant 0 : index
    %124 = vector.load %arg12[%c2_100, %c0_101, %c0_102] : memref<3x128x64xbf16, #tpu.memory_space<vmem>>, vector<1x128x64xbf16>
    %125 = vector.shape_cast %124 : vector<1x128x64xbf16> to vector<128x64xbf16>
    %cst_103 = arith.constant dense<0.000000e+00> : vector<4x64xf32>
    %126 = tpu.matmul %123, %125, %cst_103 {dimension_numbers = #tpu.dot_dimension_numbers<[1], [0], [0], [1], [0, 0, 1, 1], [], []>} : vector<4x128xbf16>, vector<128x64xbf16>, vector<4x64xf32> -> vector<4x64xf32>
    %127 = arith.addf %119, %126 : vector<4x64xf32>
    %c0_104 = arith.constant 0 : index
    %c0_105 = arith.constant 0 : index
    %128 = vector.load %arg13[%c0_104, %c0_105] : memref<2x64xf32, #tpu.memory_space<vmem>>, vector<2x64xf32>
    %129 = vector.extract_strided_slice %128 {offsets = [0, 0], sizes = [1, 64], strides = [1, 1]} : vector<2x64xf32> to vector<1x64xf32>
    %130 = vector.broadcast %129 : vector<1x64xf32> to vector<4x64xf32>
    %131 = arith.mulf %127, %130 : vector<4x64xf32>
    %132 = vector.extract_strided_slice %128 {offsets = [1, 0], sizes = [1, 64], strides = [1, 1]} : vector<2x64xf32> to vector<1x64xf32>
    %133 = vector.broadcast %132 : vector<1x64xf32> to vector<4x64xf32>
    %134 = arith.addf %131, %133 : vector<4x64xf32>
    %c0_106 = arith.constant 0 : index
    %c0_107 = arith.constant 0 : index
    %135 = vector.load %arg15[%c0_106, %c0_107] : memref<1x128xf32, #tpu.memory_space<vmem>>, vector<1x128xf32>
    %136 = vector.extract_strided_slice %134 {offsets = [0, 0], sizes = [1, 64], strides = [1, 1]} : vector<4x64xf32> to vector<1x64xf32>
    %137 = arith.truncf %136 : vector<1x64xf32> to vector<1x64xbf16>
    %c0_108 = arith.constant 0 : index
    %c0_109 = arith.constant 0 : index
    %c0_110 = arith.constant 0 : index
    %138 = vector.load %arg14[%c0_108, %c0_109, %c0_110] : memref<4x64x128xbf16, #tpu.memory_space<vmem>>, vector<1x64x128xbf16>
    %139 = vector.shape_cast %138 : vector<1x64x128xbf16> to vector<64x128xbf16>
    %cst_111 = arith.constant dense<0.000000e+00> : vector<1x128xf32>
    %140 = tpu.matmul %137, %139, %cst_111 {dimension_numbers = #tpu.dot_dimension_numbers<[1], [0], [0], [1], [0, 0, 1, 1], [], []>} : vector<1x64xbf16>, vector<64x128xbf16>, vector<1x128xf32> -> vector<1x128xf32>
    %141 = arith.addf %135, %140 : vector<1x128xf32>
    %142 = vector.extract_strided_slice %134 {offsets = [1, 0], sizes = [1, 64], strides = [1, 1]} : vector<4x64xf32> to vector<1x64xf32>
    %143 = arith.truncf %142 : vector<1x64xf32> to vector<1x64xbf16>
    %c1_112 = arith.constant 1 : index
    %c0_113 = arith.constant 0 : index
    %c0_114 = arith.constant 0 : index
    %144 = vector.load %arg14[%c1_112, %c0_113, %c0_114] : memref<4x64x128xbf16, #tpu.memory_space<vmem>>, vector<1x64x128xbf16>
    %145 = vector.shape_cast %144 : vector<1x64x128xbf16> to vector<64x128xbf16>
    %cst_115 = arith.constant dense<0.000000e+00> : vector<1x128xf32>
    %146 = tpu.matmul %143, %145, %cst_115 {dimension_numbers = #tpu.dot_dimension_numbers<[1], [0], [0], [1], [0, 0, 1, 1], [], []>} : vector<1x64xbf16>, vector<64x128xbf16>, vector<1x128xf32> -> vector<1x128xf32>
    %147 = arith.addf %141, %146 : vector<1x128xf32>
    %148 = vector.extract_strided_slice %134 {offsets = [2, 0], sizes = [1, 64], strides = [1, 1]} : vector<4x64xf32> to vector<1x64xf32>
    %149 = arith.truncf %148 : vector<1x64xf32> to vector<1x64xbf16>
    %c2_116 = arith.constant 2 : index
    %c0_117 = arith.constant 0 : index
    %c0_118 = arith.constant 0 : index
    %150 = vector.load %arg14[%c2_116, %c0_117, %c0_118] : memref<4x64x128xbf16, #tpu.memory_space<vmem>>, vector<1x64x128xbf16>
    %151 = vector.shape_cast %150 : vector<1x64x128xbf16> to vector<64x128xbf16>
    %cst_119 = arith.constant dense<0.000000e+00> : vector<1x128xf32>
    %152 = tpu.matmul %149, %151, %cst_119 {dimension_numbers = #tpu.dot_dimension_numbers<[1], [0], [0], [1], [0, 0, 1, 1], [], []>} : vector<1x64xbf16>, vector<64x128xbf16>, vector<1x128xf32> -> vector<1x128xf32>
    %153 = arith.addf %147, %152 : vector<1x128xf32>
    %154 = vector.extract_strided_slice %134 {offsets = [3, 0], sizes = [1, 64], strides = [1, 1]} : vector<4x64xf32> to vector<1x64xf32>
    %155 = arith.truncf %154 : vector<1x64xf32> to vector<1x64xbf16>
    %c3 = arith.constant 3 : index
    %c0_120 = arith.constant 0 : index
    %c0_121 = arith.constant 0 : index
    %156 = vector.load %arg14[%c3, %c0_120, %c0_121] : memref<4x64x128xbf16, #tpu.memory_space<vmem>>, vector<1x64x128xbf16>
    %157 = vector.shape_cast %156 : vector<1x64x128xbf16> to vector<64x128xbf16>
    %cst_122 = arith.constant dense<0.000000e+00> : vector<1x128xf32>
    %158 = tpu.matmul %155, %157, %cst_122 {dimension_numbers = #tpu.dot_dimension_numbers<[1], [0], [0], [1], [0, 0, 1, 1], [], []>} : vector<1x64xbf16>, vector<64x128xbf16>, vector<1x128xf32> -> vector<1x128xf32>
    %159 = arith.addf %153, %158 : vector<1x128xf32>
    %c0_123 = arith.constant 0 : index
    %c0_124 = arith.constant 0 : index
    %c0_125 = arith.constant 0 : index
    %160 = vector.load %arg16[%c0_123, %c0_124, %c0_125] : memref<1x1x128xf32, #tpu.memory_space<vmem>>, vector<1x1x128xf32>
    %161 = vector.shape_cast %160 : vector<1x1x128xf32> to vector<1x128xf32>
    %162 = vector.shape_cast %159 : vector<1x128xf32> to vector<1x1x128xf32>
    tpu.vector_store %arg16[%c0_123, %c0_124, %c0_125], %162 {strides = array<i32>} : memref<1x1x128xf32, #tpu.memory_space<vmem>>, vector<1x1x128xf32>,
    return
  }
  func.func @transform_0(%arg0: i32) -> (i32, i32, i32) {
    %c0_i32 = arith.constant 0 : i32
    %c0_i32_0 = arith.constant 0 : i32
    %c0_i32_1 = arith.constant 0 : i32
    return %arg0, %c0_i32, %c0_i32_0 : i32, i32, i32
  }
  func.func @transform_1(%arg0: i32) -> (i32, i32, i32) {
    %c0_i32 = arith.constant 0 : i32
    %c0_i32_0 = arith.constant 0 : i32
    %c0_i32_1 = arith.constant 0 : i32
    %c0_i32_2 = arith.constant 0 : i32
    return %c0_i32, %c0_i32_0, %c0_i32_1 : i32, i32, i32
  }
  func.func @transform_2(%arg0: i32) -> (i32, i32, i32) {
    %c0_i32 = arith.constant 0 : i32
    %c0_i32_0 = arith.constant 0 : i32
    %c0_i32_1 = arith.constant 0 : i32
    %c0_i32_2 = arith.constant 0 : i32
    return %c0_i32, %c0_i32_0, %c0_i32_1 : i32, i32, i32
  }
  func.func @transform_3(%arg0: i32) -> (i32, i32) {
    %c0_i32 = arith.constant 0 : i32
    %c0_i32_0 = arith.constant 0 : i32
    %c0_i32_1 = arith.constant 0 : i32
    return %c0_i32, %c0_i32_0 : i32, i32
  }
  func.func @transform_4(%arg0: i32) -> (i32, i32, i32) {
    %c0_i32 = arith.constant 0 : i32
    %c0_i32_0 = arith.constant 0 : i32
    %c0_i32_1 = arith.constant 0 : i32
    %c0_i32_2 = arith.constant 0 : i32
    return %c0_i32, %c0_i32_0, %c0_i32_1 : i32, i32, i32
  }
  func.func @transform_5(%arg0: i32) -> (i32, i32, i32) {
    %c0_i32 = arith.constant 0 : i32
    %c0_i32_0 = arith.constant 0 : i32
    %c0_i32_1 = arith.constant 0 : i32
    %c0_i32_2 = arith.constant 0 : i32
    return %c0_i32, %c0_i32_0, %c0_i32_1 : i32, i32, i32
  }
  func.func @transform_6(%arg0: i32) -> (i32, i32) {
    %c0_i32 = arith.constant 0 : i32
    %c0_i32_0 = arith.constant 0 : i32
    %c0_i32_1 = arith.constant 0 : i32
    return %c0_i32, %c0_i32_0 : i32, i32
  }
  func.func @transform_7(%arg0: i32) -> (i32, i32, i32) {
    %c0_i32 = arith.constant 0 : i32
    %c0_i32_0 = arith.constant 0 : i32
    %c0_i32_1 = arith.constant 0 : i32
    %c0_i32_2 = arith.constant 0 : i32
    return %c0_i32, %c0_i32_0, %c0_i32_1 : i32, i32, i32
  }
  func.func @transform_8(%arg0: i32) -> (i32, i32, i32) {
    %c0_i32 = arith.constant 0 : i32
    %c0_i32_0 = arith.constant 0 : i32
    %c0_i32_1 = arith.constant 0 : i32
    %c0_i32_2 = arith.constant 0 : i32
    return %c0_i32, %c0_i32_0, %c0_i32_1 : i32, i32, i32
  }
  func.func @transform_9(%arg0: i32) -> (i32, i32) {
    %c0_i32 = arith.constant 0 : i32
    %c0_i32_0 = arith.constant 0 : i32
    %c0_i32_1 = arith.constant 0 : i32
    return %c0_i32, %c0_i32_0 : i32, i32
  }
  func.func @transform_10(%arg0: i32) -> (i32, i32, i32) {
    %c0_i32 = arith.constant 0 : i32
    %c0_i32_0 = arith.constant 0 : i32
    %c0_i32_1 = arith.constant 0 : i32
    %c0_i32_2 = arith.constant 0 : i32
    return %c0_i32, %c0_i32_0, %c0_i32_1 : i32, i32, i32
  }
  func.func @transform_11(%arg0: i32) -> (i32, i32, i32) {
    %c0_i32 = arith.constant 0 : i32
    %c0_i32_0 = arith.constant 0 : i32
    %c0_i32_1 = arith.constant 0 : i32
    %c0_i32_2 = arith.constant 0 : i32
    return %c0_i32, %c0_i32_0, %c0_i32_1 : i32, i32, i32
  }
  func.func @transform_12(%arg0: i32) -> (i32, i32) {
    %c0_i32 = arith.constant 0 : i32
    %c0_i32_0 = arith.constant 0 : i32
    %c0_i32_1 = arith.constant 0 : i32
    return %c0_i32, %c0_i32_0 : i32, i32
  }
  func.func @transform_13(%arg0: i32) -> (i32, i32, i32) {
    %c0_i32 = arith.constant 0 : i32
    %c0_i32_0 = arith.constant 0 : i32
    %c0_i32_1 = arith.constant 0 : i32
    %c0_i32_2 = arith.constant 0 : i32
    return %c0_i32, %c0_i32_0, %c0_i32_1 : i32, i32, i32
  }
  func.func @transform_14(%arg0: i32) -> (i32, i32) {
    %c0_i32 = arith.constant 0 : i32
    %c0_i32_0 = arith.constant 0 : i32
    %c0_i32_1 = arith.constant 0 : i32
    return %c0_i32, %c0_i32_0 : i32, i32
  }
  func.func @transform_15(%arg0: i32) -> (i32, i32, i32) {
    %c0_i32 = arith.constant 0 : i32
    %c0_i32_0 = arith.constant 0 : i32
    %c0_i32_1 = arith.constant 0 : i32
    return %arg0, %c0_i32, %c0_i32_0 : i32, i32, i32
  }
}

</mosaic_0001>

<bundles_post_ra>
// kernel: resnet4_forward.1
= control target key start
LH: loop header
LB: loop body
LE: loop exit
PB: predicated region body
PF: predicated region fallthrough
CT: control target
= control target key end

     0   :  { %s5952_s0 = inlined_call_operand.vmem [shape: f32[2,32,96], index: 0, kind: input, shape index: {}]   ;;  %s5953_s1 = inlined_call_operand.hbm [shape: bf16[3,16,32], index: 1, kind: input, shape index: {}]   ;;  %s5954_s2 = inlined_call_operand.hbm [shape: bf16[3,96,256], index: 2, kind: input, shape index: {}]   ;;  %s5955_s3 = inlined_call_operand.vmem [shape: f32[2,256], index: 3, kind: input, shape index: {}]   ;;  %s5956_s4 = inlined_call_operand.vmem [shape: bf16[3,8,16], index: 4, kind: input, shape index: {}]   ;;  %s5957_s5 = inlined_call_operand.vmem [shape: bf16[3,256,256], index: 5, kind: input, shape index: {}]   ;;  %s5958_s6 = inlined_call_operand.hbm [shape: f32[2,256], index: 6, kind: input, shape index: {}]   ;;  %s5959_s7 = inlined_call_operand.hbm [shape: bf16[3,8,8], index: 7, kind: input, shape index: {}]   ;;  %s5960_s8 = inlined_call_operand.vmem [shape: bf16[3,128,128], index: 8, kind: input, shape index: {}]   ;;  %s5961_s9 = inlined_call_operand.hbm [shape: f32[2,128], index: 9, kind: input, shape index: {}]   ;;  %s5962_s10 = inlined_call_operand.hbm [shape: bf16[3,4,8], index: 10, kind: input, shape index: {}]   ;;  %s5963_s11 = inlined_call_operand.vmem [shape: bf16[3,128,64], index: 11, kind: input, shape index: {}]   ;;  %s5964_s12 = inlined_call_operand.hbm [shape: f32[2,64], index: 12, kind: input, shape index: {}]   ;;  %s5965_s13 = inlined_call_operand.hbm [shape: bf16[4,64,128], index: 13, kind: input, shape index: {}]   ;;  %s5966_s14 = inlined_call_operand.vmem [shape: f32[1,128], index: 14, kind: input, shape index: {}]   ;;  %s5967_s15 = inlined_call_operand.hbm [shape: f32[2,1,128], index: 15, kind: output, shape index: {}]  }
   0x1   :  { %5987 = sst [smem:[#allocation31_spill]] %s5954_s2 }
   0x2   :  { %5988 = sst [smem:[#allocation32_spill]] %s5960_s8 }
   0x3   :  { %5989 = sst [smem:[#allocation33_spill]] %s5963_s11 }
   0x4   :  { %5990 = sst [smem:[#allocation34_spill]] %s5966_s14 }
   0x5   :  { %5991 = sst [smem:[#allocation35_spill]] %s5967_s15 }
   0x6   :  { %20 = vsyncpa [#allocation3], 0 }
   0x7   :  { %21 = vsyncpa [#allocation6], 0 }
   0x8   :  { %22 = vsyncpa [#allocation9], 0 }
   0x9   :  { %23 = vsyncpa [#allocation12], 0 }
   0xa   :  { %24 = vsyncpa [#allocation15], 0 }
   0xb   :  { %25 = vsyncpa [#allocation4], 0 }
   0xc   :  { %27 = vsyncpa [#allocation4 + $0x1], 0  ;;  %s5015_s18 = smov 0   ;;  %s5017_s19 = smov 0  }
   0xd   :  { %s5019_s20 = smov 0   ;;  %s5021_s21 = smov 0  }
   0xe LB: > { %5992 = sst [smem:[#allocation23_spill]] %s4903_s18  ;;  %s5036_s22 = sadd.s32 4294967295, %s4915_s21   ;;  %s4915_s21 = sphi %s5021_s21, %s6031_s21   ;;  %s4911_s20 = sphi %s5019_s20, %s6034_s20   ;;  %s4907_s19 = sphi %s5017_s19, %s6033_s19   ;;  %s4903_s18 = sphi %s5015_s18, %s6032_s18  }
   0xf   : > { %5993 = sst [smem:[#allocation24_spill]] %s4907_s19  ;;  %s3473_s23 = sadd.s32 4294967294, %s4915_s21  }
  0x10   : > { %5994 = sst [smem:[#allocation25_spill]] %s4911_s20  ;;  %s5040_s24 = sadd.s32 1, %s4915_s21  }
  0x11   : > { %5995 = sst [smem:[#allocation26_spill]] %s4915_s21  ;;  %s360_s25 = sadd.s32 1, %s4911_s20 }
  0x12   : > { %5996 = sst [smem:[#allocation27_spill]] %s5040_s24  ;;  %s357_s26 = ssub.s32 %s4915_s21, %s5040_s24 }
  0x13   : > { %p370_p0 = scmp.ne.s32.totalorder %s4911_s20, %s4907_s19  ;;  %p358_p1 = scmp.eq.s32.totalorder %s357_s26, 0 }
  0x14   : > { %p371_p2 = scmp.eq.s32.totalorder %s5036_s22, 1  ;;  %p376_p3 = scmp.ne.s32.totalorder %s4907_s19, %s4903_s18 }
  0x15   : > { %p377_p4 = scmp.eq.s32.totalorder %s3473_s23, 1  ;;  %p3474_p7 = scmp.ge.s32.totalorder %s4915_s21, 1 }
  0x16   : > { %s5051_s27 = scalar_select %p358_p1, %s4911_s20, %s360_s25  }
  0x17   : > { %p5053_p5 = por %p371_p2, %p370_p0  ;;  %p5057_p6 = por %p377_p4, %p376_p3 }
  0x18   : > { %5997 = sst [smem:[#allocation28_spill]] %s5051_s27  ;;  %p384_p8 = scmp.lt.s32.totalorder %s4915_s21, 3 }
  0x19   : > { %s5998_s28 = scalar_select %p5053_p5, 1, 0 }
  0x1a   : > { %s6000_s29 = scalar_select %p5057_p6, 1, 0 }
  0x1b   : > { %5999 = sst [smem:[#allocation29_spill]] %s5998_s28  ;;  %p5975_p9 = scmp.eq.s32.totalorder %s5036_s22, 0 }
  0x1c   : > { %6001 = sst [smem:[#allocation30_spill]] %s6000_s29  ;;  %p5064_p10 = pnand %p3474_p7, %p384_p8 }
  0x1d   : > { %s4917_s16 = smov [#allocation5]   ;;  %s4918_s25 = smov [#allocation8]  }
  0x1e   : > { %s6002_s30 = scalar_select %p5064_p10, 1, 0 }
  0x1f   : > { %s409_s17 = sshll.u32 %s4917_s16, 4  ;;  %p4249_p11 = pneg %p5064_p10  ;;  %s410_s17 = int_to_ptr.vmem [resolvable:$true] %s409_s17 }
  0x20   : > { %s442_s26 = sshll.u32 %s4918_s25, 4  ;;  %s6004_s2 = sld [smem:[#allocation31_spill]]  ;;  %s443_s26 = int_to_ptr.vmem [resolvable:$true] %s442_s26 }
  0x21   : > { %p5072_p12 = pnand %p5975_p9, %p4249_p11 }
  0x23   : > { %p5084_p0 = pneg %p5072_p12 }
  0x26   : > { %s4609_s24 = scalar_lea.hbm %s6004_s2, 4608 }
  0x27   : > { %p4610_p13 = scmp.ne.s32.totalorder %s6004_s2, %s4609_s24  ;;  %p4616_p3 = scmp.lt.u32.totalorder %s4609_s24, %s6004_s2 }
  0x29   : > { %p4612_p1 = pnand %p5084_p0, %p4610_p13 }
  0x2b   : > { %p4613_p2 = pneg %p4612_p1 }
  0x2d   : > { %p4618_p4 = pnand %p4616_p3, %p4613_p2 }
  0x2f   : > { %4621 = shalt.err (!%p4618_p4)
}
  0x30   : > { %s4622_s20 = scalar_lea.vmem %s410_s17, 4608  ;;  %p4630_p9 = scmp.lt.s32.totalorder %s410_s17, %s410_s17 }
  0x31   : > { %p4623_p7 = scmp.ne.s32.totalorder %s410_s17, %s4622_s20  ;;  %p4631_p6 = scmp.lt.s32.totalorder %s4622_s20, %s4622_s20 }
  0x33   : > { %p4625_p8 = pnand %p4623_p7, %p5084_p0  ;;  %p4632_p5 = por %p4631_p6, %p4630_p9 }
  0x35   : > { %p4626_p11 = pneg %p4625_p8 }
  0x37   : > { %p4633_p10 = pnand %p4632_p5, %p4626_p11 }
  0x39   : > { %4636 = shalt.err (!%p4633_p10)
}
  0x3a   : > { %s4919_s18 = smov 128   ;;  %s4920_s27 = smov 8  }
  0x3b   : > { %4255 = dma.hbm_to_vmem [thread:$0]  (!%p5072_p12), %s6004_s2, 4608, %s410_s17, [#allocation6], %s4919_s18, %s4919_s18, %s4920_s27  }
  0x3c   : > { %s4921_s24 = smov [#allocation11]   ;;  %s4637_s14 = scalar_lea.hbm %s5959_s7, 192 }
  0x3d   : > { %s469_s29 = sshll.u32 %s4921_s24, 4  ;;  %p4638_p5 = scmp.ne.s32.totalorder %s5959_s7, %s4637_s14  ;;  %s470_s29 = int_to_ptr.vmem [resolvable:$true] %s469_s29 }
  0x3e   : > { %p4644_p10 = scmp.lt.u32.totalorder %s4637_s14, %s5959_s7 }
  0x3f   : > { %p4640_p6 = pnand %p4638_p5, %p5084_p0 }
  0x41   : > { %p4641_p9 = pneg %p4640_p6 }
  0x43   : > { %p4646_p13 = pnand %p4644_p10, %p4641_p9 }
  0x45   : > { %4649 = shalt.err (!%p4646_p13)
}
  0x46   : > { %s4650_s17 = scalar_lea.vmem %s443_s26, 192  ;;  %p4658_p4 = scmp.lt.s32.totalorder %s443_s26, %s443_s26 }
  0x47   : > { %p4651_p1 = scmp.ne.s32.totalorder %s443_s26, %s4650_s17  ;;  %p4659_p7 = scmp.lt.s32.totalorder %s4650_s17, %s4650_s17 }
  0x49   : > { %p4653_p2 = pnand %p4651_p1, %p5084_p0  ;;  %p4660_p8 = por %p4659_p7, %p4658_p4 }
  0x4b   : > { %p4654_p3 = pneg %p4653_p2 }
  0x4d   : > { %p4661_p11 = pnand %p4660_p8, %p4654_p3 }
  0x4f   : > { %4664 = shalt.err (!%p4661_p11)
}
  0x50   : > { %s5983_s19 = smov 64   ;;  %s5985_s28 = smov 4  }
  0x51   : > { %4261 = dma.hbm_to_vmem [thread:$0]  (!%p5072_p12), %s5959_s7, 192, %s443_s26, [#allocation9], %s5983_s19, %s5983_s19, %s5985_s28  }
  0x52   : > { %s4665_s27 = scalar_lea.hbm %s5962_s10, 96 }
  0x53   : > { %p4666_p5 = scmp.ne.s32.totalorder %s5962_s10, %s4665_s27  ;;  %p4672_p10 = scmp.lt.u32.totalorder %s4665_s27, %s5962_s10 }
  0x55   : > { %p4668_p6 = pnand %p4666_p5, %p5084_p0 }
  0x57   : > { %p4669_p9 = pneg %p4668_p6 }
  0x59   : > { %p4674_p13 = pnand %p4672_p10, %p4669_p9 }
  0x5b   : > { %4677 = shalt.err (!%p4674_p13)
}
  0x5c   : > { %s4678_s20 = scalar_lea.vmem %s470_s29, 96  ;;  %p4686_p4 = scmp.lt.s32.totalorder %s470_s29, %s470_s29 }
  0x5d   : > { %p4679_p1 = scmp.ne.s32.totalorder %s470_s29, %s4678_s20  ;;  %p4687_p7 = scmp.lt.s32.totalorder %s4678_s20, %s4678_s20 }
  0x5f   : > { %p4681_p2 = pnand %p4679_p1, %p5084_p0  ;;  %p4688_p8 = por %p4687_p7, %p4686_p4 }
  0x61   : > { %p4682_p3 = pneg %p4681_p2 }
  0x63   : > { %p4689_p11 = pnand %p4688_p8, %p4682_p3 }
  0x65   : > { %4692 = shalt.err (!%p4689_p11)
}
  0x66   : > { %s4924_s26 = smov 32   ;;  %s4925_s17 = smov 2  }
  0x67   : > { %4267 = dma.hbm_to_vmem [thread:$0]  (!%p5072_p12), %s5962_s10, 96, %s470_s29, [#allocation12], %s4924_s26, %s4924_s26, %s4925_s17  }
  0x68   : > { %s4926_s14 = smov [#allocation2]   ;;  %s4927_s27 = smov [#allocation7]  }
  0x69   : > { %s396_s18 = sshll.u32 %s4926_s14, 4  ;;  %s432_s15 = sshll.u32 %s4927_s27, 4  ;;  %s397_s18 = int_to_ptr.vmem [resolvable:$true] %s396_s18  ;;  %s433_s15 = int_to_ptr.vmem [resolvable:$true] %s432_s15 }
  0x6a   : > { %s4693_s25 = scalar_lea.hbm %s5953_s1, 384 }
  0x6b   : > { %p4694_p5 = scmp.ne.s32.totalorder %s5953_s1, %s4693_s25  ;;  %p4700_p10 = scmp.lt.u32.totalorder %s4693_s25, %s5953_s1 }
  0x6d   : > { %p4696_p6 = pnand %p4694_p5, %p5084_p0 }
  0x6f   : > { %p4697_p9 = pneg %p4696_p6 }
  0x71   : > { %p4702_p13 = pnand %p4700_p10, %p4697_p9 }
  0x73   : > { %4705 = shalt.err (!%p4702_p13)
}
  0x74   : > { %s4706_s29 = scalar_lea.vmem %s397_s18, 384  ;;  %p4714_p4 = scmp.lt.s32.totalorder %s397_s18, %s397_s18 }
  0x75   : > { %p4707_p1 = scmp.ne.s32.totalorder %s397_s18, %s4706_s29  ;;  %p4715_p7 = scmp.lt.s32.totalorder %s4706_s29, %s4706_s29 }
  0x77   : > { %p4709_p2 = pnand %p4707_p1, %p5084_p0  ;;  %p4716_p8 = por %p4715_p7, %p4714_p4 }
  0x79   : > { %p4710_p3 = pneg %p4709_p2 }
  0x7b   : > { %p4717_p11 = pnand %p4716_p8, %p4710_p3 }
  0x7d   : > { %4720 = shalt.err (!%p4717_p11)
}
  0x7e   : > { %s6006_s19 = smov 4   ;;  %s6007_s26 = smov 64  }
  0x7f   : > { %4252 = dma.hbm_to_vmem [thread:$0]  (!%p5072_p12), %s5953_s1, 384, %s397_s18, [#allocation3], %s6007_s26, %s6007_s26, %s6006_s19  }
  0x80   : > { %s4721_s11 = scalar_lea.hbm %s5958_s6, 64 }
  0x81   : > { %p4722_p5 = scmp.ne.s32.totalorder %s5958_s6, %s4721_s11  ;;  %p4728_p10 = scmp.lt.u32.totalorder %s4721_s11, %s5958_s6 }
  0x83   : > { %p4724_p6 = pnand %p4722_p5, %p5084_p0 }
  0x85   : > { %p4725_p9 = pneg %p4724_p6 }
  0x87   : > { %p4730_p13 = pnand %p4728_p10, %p4725_p9 }
  0x89   : > { %4733 = shalt.err (!%p4730_p13)
}
  0x8a   : > { %s4734_s25 = scalar_lea.vmem %s433_s15, 64  ;;  %p4742_p4 = scmp.lt.s32.totalorder %s433_s15, %s433_s15 }
  0x8b   : > { %p4735_p1 = scmp.ne.s32.totalorder %s433_s15, %s4734_s25  ;;  %p4743_p7 = scmp.lt.s32.totalorder %s4734_s25, %s4734_s25 }
  0x8d   : > { %p4737_p2 = pnand %p4735_p1, %p5084_p0  ;;  %p4744_p8 = por %p4743_p7, %p4742_p4 }
  0x8f   : > { %p4738_p3 = pneg %p4737_p2 }
  0x91   : > { %p4745_p11 = pnand %p4744_p8, %p4738_p3 }
  0x93   : > { %4748 = shalt.err (!%p4745_p11)
}
  0x94   : > { %4258 = dma.hbm_to_vmem [thread:$0]  (!%p5072_p12), %s5958_s6, 64, %s433_s15, [#allocation6]  }
  0x95   : > { %s4928_s29 = smov [#allocation10]   ;;  %s4929_s28 = smov [#allocation13]  }
  0x96   : > { %s459_s2 = sshll.u32 %s4928_s29, 4  ;;  %s486_s17 = sshll.u32 %s4929_s28, 4  ;;  %s460_s2 = int_to_ptr.vmem [resolvable:$true] %s459_s2  ;;  %s487_s17 = int_to_ptr.vmem [resolvable:$true] %s486_s17 }
  0x97   : > { %s4749_s14 = scalar_lea.hbm %s5961_s9, 32 }
  0x98   : > { %p4750_p5 = scmp.ne.s32.totalorder %s5961_s9, %s4749_s14  ;;  %p4756_p10 = scmp.lt.u32.totalorder %s4749_s14, %s5961_s9 }
  0x9a   : > { %p4752_p6 = pnand %p4750_p5, %p5084_p0 }
  0x9c   : > { %p4753_p9 = pneg %p4752_p6 }
  0x9e   : > { %p4758_p13 = pnand %p4756_p10, %p4753_p9 }
  0xa0   : > { %4761 = shalt.err (!%p4758_p13)
}
  0xa1   : > { %s4762_s15 = scalar_lea.vmem %s460_s2, 32  ;;  %p4770_p4 = scmp.lt.s32.totalorder %s460_s2, %s460_s2 }
  0xa2   : > { %p4763_p1 = scmp.ne.s32.totalorder %s460_s2, %s4762_s15  ;;  %p4771_p7 = scmp.lt.s32.totalorder %s4762_s15, %s4762_s15 }
  0xa4   : > { %p4765_p2 = pnand %p4763_p1, %p5084_p0  ;;  %p4772_p8 = por %p4771_p7, %p4770_p4 }
  0xa6   : > { %p4766_p3 = pneg %p4765_p2 }
  0xa8   : > { %p4773_p11 = pnand %p4772_p8, %p4766_p3 }
  0xaa   : > { %4776 = shalt.err (!%p4773_p11)
}
  0xab   : > { %4264 = dma.hbm_to_vmem [thread:$0]  (!%p5072_p12), %s5961_s9, 32, %s460_s2, [#allocation9]  }
  0xac   : > { %s4777_s8 = scalar_lea.hbm %s5964_s12, 32 }
  0xad   : > { %p4778_p5 = scmp.ne.s32.totalorder %s5964_s12, %s4777_s8  ;;  %p4784_p10 = scmp.lt.u32.totalorder %s4777_s8, %s5964_s12 }
  0xaf   : > { %p4780_p6 = pnand %p4778_p5, %p5084_p0 }
  0xb1   : > { %p4781_p9 = pneg %p4780_p6 }
  0xb3   : > { %p4786_p13 = pnand %p4784_p10, %p4781_p9 }
  0xb5   : > { %4789 = shalt.err (!%p4786_p13)
}
  0xb6   : > { %s4790_s24 = scalar_lea.vmem %s487_s17, 32  ;;  %p4798_p4 = scmp.lt.s32.totalorder %s487_s17, %s487_s17 }
  0xb7   : > { %p4791_p1 = scmp.ne.s32.totalorder %s487_s17, %s4790_s24  ;;  %p4799_p7 = scmp.lt.s32.totalorder %s4790_s24, %s4790_s24 }
  0xb9   : > { %p4793_p2 = pnand %p4791_p1, %p5084_p0  ;;  %p4800_p8 = por %p4799_p7, %p4798_p4 }
  0xbb   : > { %p4794_p3 = pneg %p4793_p2 }
  0xbd   : > { %p4801_p11 = pnand %p4800_p8, %p4794_p3 }
  0xbf   : > { %4804 = shalt.err (!%p4801_p11)
}
  0xc0   : > { %4270 = dma.hbm_to_vmem [thread:$0]  (!%p5072_p12), %s5964_s12, 32, %s487_s17, [#allocation12]  }
  0xc1   : > { %s4930_s15 = smov [#allocation14]   ;;  %s4805_s28 = scalar_lea.hbm %s5965_s13, 2048 }
  0xc2   : > { %s496_s18 = sshll.u32 %s4930_s15, 4  ;;  %p4806_p5 = scmp.ne.s32.totalorder %s5965_s13, %s4805_s28  ;;  %s497_s18 = int_to_ptr.vmem [resolvable:$true] %s496_s18 }
  0xc3   : > { %p4812_p10 = scmp.lt.u32.totalorder %s4805_s28, %s5965_s13 }
  0xc4   : > { %p4808_p6 = pnand %p4806_p5, %p5084_p0 }
  0xc6   : > { %p4809_p9 = pneg %p4808_p6 }
  0xc8   : > { %p4814_p13 = pnand %p4812_p10, %p4809_p9 }
  0xca   : > { %4817 = shalt.err (!%p4814_p13)
}
  0xcb   : > { %s4818_s17 = scalar_lea.vmem %s497_s18, 2048  ;;  %p4826_p4 = scmp.lt.s32.totalorder %s497_s18, %s497_s18 }
  0xcc   : > { %p4819_p1 = scmp.ne.s32.totalorder %s497_s18, %s4818_s17  ;;  %p4827_p7 = scmp.lt.s32.totalorder %s4818_s17, %s4818_s17 }
  0xce   : > { %p4821_p2 = pnand %p4819_p1, %p5084_p0  ;;  %p4828_p8 = por %p4827_p7, %p4826_p4 }
  0xd0   : > { %p4822_p3 = pneg %p4821_p2 }
  0xd2   : > { %p4829_p11 = pnand %p4828_p8, %p4822_p3 }
  0xd4   : > { %4832 = shalt.err (!%p4829_p11)
}
  0xd5   : > { %4273 = dma.hbm_to_vmem [thread:$0]  (!%p5072_p12), %s5965_s13, 2048, %s497_s18, [#allocation15], %s6007_s26, %s6007_s26, %s6006_s19  }
  0xd6   : > { %p6008_p5 = scmp.ne.s32.totalorder %s6002_s30, 0 }
  0xd7   : > { %p6009_p0 = scmp.eq.s32.totalorder (!%p6008_p5), %s5036_s22, 0 }
  0xd8   : > { %523 = sbr.rel (%p6008_p5) target bundleno = 2809 (0xaf9), region = 80 }
  0xdf   : > { %4878 = dma.done.wait (%p6009_p0), [#allocation3], 384   ;;  %p6010_p6 = pmov %p6009_p0 }
  0xe0   : > { %p6011_p9 = pmov %p6009_p0 }
  0xe1   : > { %4880 = vsyncadd (%p6010_p6), [#allocation3], 4294966912 }
  0xe2   : > { %4882 = dma.done.wait (%p6011_p9), [#allocation6], 4672   ;;  %p6012_p10 = pmov %p6009_p0 }
  0xe3   : > { %p6013_p13 = pmov %p6009_p0 }
  0xe4   : > { %4884 = vsyncadd (%p6012_p10), [#allocation6], 4294962624 }
  0xe5   : > { %4886 = dma.done.wait (%p6013_p13), [#allocation9], 224   ;;  %p6014_p12 = pmov %p6009_p0 }
  0xe6   : > { %p6015_p1 = pmov %p6009_p0 }
  0xe7   : > { %4888 = vsyncadd (%p6014_p12), [#allocation9], 4294967072 }
  0xe8   : > { %4890 = dma.done.wait (%p6015_p1), [#allocation12], 128   ;;  %p6016_p2 = pmov %p6009_p0 }
  0xe9   : > { %p6017_p3 = pmov %p6009_p0 }
  0xea   : > { %4892 = vsyncadd (%p6016_p2), [#allocation12], 4294967168 }
  0xeb   : > { %4894 = dma.done.wait (%p6017_p3), [#allocation15], 2048   ;;  %p6018_p4 = pmov %p6009_p0 }
  0xec   : > { %p598_p7 = scmp.lt.s32.totalorder %s5036_s22, 1  ;;  %v4931_v0 = vmov 0.0   ;;  %vm4932_vm0 = vmmov 0   ;;  %v4347_v7 = vld [vmem:[#allocation5 + $0x64] ss:$8 sps:$4 sm:$0xff]   ;;  %vm617_vm1 = vcmask 261120   ;;  %v1132_v62 = vlaneseq }
  0xed   : > { %4896 = vsyncadd (%p6018_p4), [#allocation15], 4294965248  ;;  %3942 = vmatprep.subr.bf16.mxu1 %v4931_v0  ;;  %3946 = vmatprep.mubr.msk.bf16.mxu1 %vm4932_vm0, %v4931_v0  ;;  %v4349_v8 = vld [vmem:[#allocation5 + $0x60] ss:$8 sps:$4 sm:$0xff]   ;;  %v4350_v10 = vld [vmem:[#allocation5 + $0x74] ss:$8 sps:$4 sm:$0xff]  }
  0xee   : > { %s599_s30 = scalar_select %p598_p7, %s5036_s22, 1  ;;  %v4344_v9 = vld [vmem:[#allocation2] sm:$0xff]   ;;  %805 = vmatprep.subr.bf16.mxu0 %v4347_v7  ;;  %v4352_v11 = vld [vmem:[#allocation5 + $0x70] ss:$8 sps:$4 sm:$0xff]   ;;  %v4356_v16 = vld [vmem:[#allocation5 + $0x94] ss:$8 sps:$4 sm:$0xff]  }
  0xef   : > { %806 = vmatpush1.bf16.msra.mxu0 %v4349_v8  ;;  %v4353_v12 = vld [vmem:[#allocation5 + $0x84] ss:$8 sps:$4 sm:$0xff]   ;;  %v4355_v13 = vld [vmem:[#allocation5 + $0x80] ss:$8 sps:$4 sm:$0xff]   ;;  %v4345_v14 = vld [vmem:[#allocation2 + $0x8] sm:$0xff]   ;;  %v4933_v23 = vmov 0  }
  0xf0   : > { %s3846_s23 = sshll.u32 %s599_s30, 5  ;;  %807 = vmatprep.subr.bf16.mxu0 %v4350_v10  ;;  %v4346_v15 = vld [vmem:[#allocation2 + $0x10] sm:$0xff]   ;;  %v4359_v18 = vld [vmem:[#allocation5 + $0xa4] ss:$8 sps:$4 sm:$0xff]   ;;  %v4361_v19 = vld [vmem:[#allocation5 + $0xa0] ss:$8 sps:$4 sm:$0xff]   ;;  %837 = vmatprep.mubr.bf16.mxu0 %v4933_v23 }
  0xf1   : > { %s602_s26 = scalar_lea.vmem %s5952_s0, %s3846_s23  ;;  %v4358_v17 = vld [vmem:[#allocation5 + $0x90] ss:$8 sps:$4 sm:$0xff]   ;;  %v4362_v20 = vld [vmem:[#allocation5 + $0xb4] ss:$8 sps:$4 sm:$0xff]   ;;  %v4367_v22 = vld [vmem:[#allocation5 + $0x4] ss:$8 sps:$4 sm:$0xff]  }
  0xf2   : > { %v604_v1 = vld [vmem:[%s602_s26] sm:$0xff]  ;;  %v605_v2 = vld [vmem:[%s602_s26 + $0x8] sm:$0xff]  ;;  %v606_v3 = vld [vmem:[%s602_s26 + $0x10] sm:$0xff]  ;;  %vm801_vm2 = vcmask 785408   ;;  %v5285_v63 = vshrl.u32 %v1132_v62, 7  ;;  %vm1183_vm3 = vcmask 130048  }
  0xf3   : > { %v608_v4 = vpack.c.bf16 %v605_v2, %v604_v1  ;;  %v607_v5 = vld [vmem:[%s602_s26 + $0x18] sm:$0xff]  ;;  %808 = vmatpush1.bf16.msra.mxu0 %v4352_v11  ;;  %v4364_v21 = vld [vmem:[#allocation5 + $0xb0] ss:$8 sps:$4 sm:$0xff]   ;;  %v4370_v35 = vld [vmem:[#allocation5 + $0x14] ss:$8 sps:$4 sm:$0xff]   ;;  %vm2078_vm4 = vcmask 1043456  }
  0xf4   : > { %v609_v6 = vpack.c.bf16 %v607_v5, %v606_v3  ;;  %809 = vmatprep.subr.bf16.mxu0 %v4353_v12  ;;  %v4365_v32 = vld [vmem:[#allocation5] ss:$8 sps:$4 sm:$0xff]   ;;  %v4368_v36 = vld [vmem:[#allocation5 + $0x10] ss:$8 sps:$4 sm:$0xff]   ;;  %v4373_v37 = vld [vmem:[#allocation5 + $0x24] ss:$8 sps:$4 sm:$0xff]  }
  0xf5   : > { %3943 = vmatpush3.bf16.msra.mxu1 %v608_v4  ;;  %v4371_v40 = vld [vmem:[#allocation5 + $0x20] ss:$8 sps:$4 sm:$0xff]   ;;  %v4376_v42 = vld [vmem:[#allocation5 + $0x34] ss:$8 sps:$4 sm:$0xff]   ;;  %v4374_v45 = vld [vmem:[#allocation5 + $0x30] ss:$8 sps:$4 sm:$0xff]  }
  0xf6   : > { %3944 = vmatprep.subr.bf16.mxu1 %v4931_v0  ;;  %v4379_v46 = vld [vmem:[#allocation5 + $0x44] ss:$8 sps:$4 sm:$0xff]   ;;  %v4377_v47 = vld [vmem:[#allocation5 + $0x40] ss:$8 sps:$4 sm:$0xff]   ;;  %v4382_v48 = vld [vmem:[#allocation5 + $0x54] ss:$8 sps:$4 sm:$0xff]  }
  0xf7   : > { %810 = vmatpush1.bf16.msra.mxu0 %v4355_v13  ;;  %v4380_v49 = vld [vmem:[#allocation5 + $0x50] ss:$8 sps:$4 sm:$0xff]   ;;  %v4385_v50 = vld [vmem:[#allocation5 + $0xc4] ss:$8 sps:$4 sm:$0xff]   ;;  %v4383_v51 = vld [vmem:[#allocation5 + $0xc0] ss:$8 sps:$4 sm:$0xff]  }
  0xf8   : > { %811 = vmatprep.subr.bf16.mxu0 %v4356_v16  ;;  %v4388_v52 = vld [vmem:[#allocation5 + $0xd4] ss:$8 sps:$4 sm:$0xff]   ;;  %v4386_v53 = vld [vmem:[#allocation5 + $0xd0] ss:$8 sps:$4 sm:$0xff]   ;;  %v4391_v54 = vld [vmem:[#allocation5 + $0xe4] ss:$8 sps:$4 sm:$0xff]  }
  0xf9   : > { %3945 = vmatpush3.bf16.msra.mxu1 %v609_v6  ;;  %v4389_v55 = vld [vmem:[#allocation5 + $0xe0] ss:$8 sps:$4 sm:$0xff]   ;;  %v4394_v56 = vld [vmem:[#allocation5 + $0xf4] ss:$8 sps:$4 sm:$0xff]   ;;  %v4392_v57 = vld [vmem:[#allocation5 + $0xf0] ss:$8 sps:$4 sm:$0xff]  }
  0xfa   : > { %3950 = vmatprep.subr.bf16.mxu1 %v4931_v0  ;;  %v4397_v58 = vld [vmem:[#allocation5 + $0x104] ss:$8 sps:$4 sm:$0xff]   ;;  %v4395_v59 = vld [vmem:[#allocation5 + $0x100] ss:$8 sps:$4 sm:$0xff]   ;;  %v4400_v60 = vld [vmem:[#allocation5 + $0x114] ss:$8 sps:$4 sm:$0xff]  }
  0xfb   : > { %812 = vmatpush1.bf16.msra.mxu0 %v4358_v17  ;;  %v4398_v61 = vld [vmem:[#allocation5 + $0x110] ss:$8 sps:$4 sm:$0xff]   ;;  %v5288_v1 = vsub.s32 0, %v5285_v63  ;;  %v1130_v2 = vld [vmem:[%s5955_s3] sm:$0xf]  ;;  %v1138_v3 = vsub.s32 2, %v5285_v63 }
  0xfc   : > { %3947 = vmatmul.mubr.msk.bf16.vlgmr.msra.gmra.mrb[0].mxu1 %vm617_vm1, %v4344_v9  ;;  %813 = vmatprep.subr.bf16.mxu0 %v4359_v18  ;;  %v1160_v5 = vsub.s32 3, %v5285_v63  ;;  %v4440_v62 = vld [vmem:[%s5957_s5 + $0x1d0] ss:$8 sps:$4 sm:$0xff]   ;;  %vm2074_vm5 = vcmask 64512   ;;  %s6019_s21 = sld [smem:[#allocation32_spill]]  ;;  %s6021_s8 = sld [smem:[#allocation33_spill]] }
  0xfd   : > { %3951 = vmatpush3.bf16.msra.mxu1 %v608_v4  ;;  %3954 = vmatprep.mubr.msk.bf16.mxu1 %vm4932_vm0, %v4931_v0  ;;  %v1139_v7 = vrot.slane %v1130_v2, %v1138_v3  ;;  %vm3044_vm6 = vcmask 523264   ;;  %s6022_s15 = sld [smem:[#allocation24_spill]]  ;;  %s6023_s28 = sld [smem:[#allocation34_spill]] }
  0xfe   : > { %3952 = vmatprep.subr.bf16.mxu1 %v4931_v0  ;;  %v1161_v9 = vrot.slane %v1130_v2, %v1160_v5  ;;  %s6024_s11 = sld [smem:[#allocation29_spill]]  ;;  %s3843_s14 = sshll.u32 %s5036_s22, 4 }
  0xff   : > { %814 = vmatpush1.bf16.msra.mxu0 %v4361_v19  ;;  %v1149_v11 = vrot.slane %v1139_v7, %v5288_v1  ;;  %v4448_v7 = vld [vmem:[%s5957_s5 + $0x1f4] ss:$8 sps:$4 sm:$0xff]   ;;  %s6025_s23 = sld [smem:[#allocation35_spill]]  ;;  %s4934_s26 = smov [#allocation16]  }
 0x100   : > { %815 = vmatprep.subr.bf16.mxu0 %v4362_v20  ;;  %s4837_s2 = sshll.u32 %s4934_s26, 4  ;;  %s4838_s2 = int_to_ptr.vmem [resolvable:$false] %s4837_s2 }
 0x101   : > { %3953 = vmatpush3.bf16.msra.mxu1 %v609_v6  ;;  %s4839_s25 = scalar_lea.vmem %s4838_s2, 32 }
 0x102   : > { %3958 = vmatprep.subr.bf16.mxu1 %v4931_v0  ;;  %s6020_s24 = smov %s6019_s21 }
 0x103   : > { %816 = vmatpush1.bf16.msra.mxu0 %v4364_v21  ;;  %s596_s18 = sand.u32 1, %s6022_s15  }
 0x104   : > { %3955 = vmatmul.mubr.msk.bf16.vlgmr.msra.gmra.mrb[4].mxu1 %vm617_vm1, %v4345_v14  ;;  %911 = vmatprep.subr.bf16.mxu0 %v4367_v22  ;;  %s597_s27 = scalar_lea.vmem [#allocation16], %s596_s18  ;;  %s3327_s19 = scalar_lea.sflag [#allocation4], %s596_s18 }
 0x105   : > { %3959 = vmatpush3.bf16.msra.mxu1 %v608_v4  ;;  %3962 = vmatprep.mubr.msk.bf16.mxu1 %vm4932_vm0, %v4931_v0  ;;  %v5295_v4 = vsub.s32 1, %v5285_v63  ;;  %s3339_s17 = sshll.u32 %s597_s27, 4  ;;  %s5910_s16 = scalar_lea.hbm %s6025_s23, %s3843_s14  ;;  %s5912_s17 = int_to_ptr.vmem [resolvable:$true] %s3339_s17 }
 0x106   : > { %3960 = vmatprep.subr.bf16.mxu1 %v4931_v0  ;;  %s4833_s22 = scalar_lea.vmem %s5912_s17, 16  ;;  %p6026_p11 = scmp.ne.s32.totalorder %s6024_s11, 0 }
 0x107   : > { %v1157_v8 = vrot.slane %v1130_v2, %v5295_v4  ;;  %v1171_v14 = vrot.slane %v1161_v9, %v5295_v4  ;;  %v4451_v9 = vld [vmem:[%s5957_s5 + $0x4] ss:$8 sps:$4 sm:$0xff]   ;;  %p4834_p8 = scmp.ne.s32.totalorder %s5912_s17, %s4833_s22  ;;  %p4840_p6 = scmp.lt.s32.totalorder %s5912_s17, %s4838_s2 }
 0x108   : > { %p4841_p9 = scmp.lt.s32.totalorder %s4839_s25, %s4833_s22 }
 0x109   : > { %3961 = vmatpush3.bf16.msra.mxu1 %v609_v6  ;;  %v1135_v6 = vrot.slane %v1130_v2, %v5288_v1  ;;  %v1167_v12 = vrot.slane %v1157_v8, %v5295_v4  ;;  %v4445_v2 = vld [vmem:[%s5957_s5 + $0x1e4] ss:$8 sps:$4 sm:$0xff]   ;;  %v4446_v8 = vld [vmem:[%s5957_s5 + $0x1f0] ss:$8 sps:$4 sm:$0xff]   ;;  %p4835_p5 = pnand %p4834_p8, %p6026_p11 }
 0x10a   : > { %p4842_p10 = por %p4841_p9, %p4840_p6 }
 0x10b   : > { %v1145_v10 = vrot.slane %v1135_v6, %v5288_v1  ;;  %v4443_v6 = vld [vmem:[%s5957_s5 + $0x1e0] ss:$8 sps:$4 sm:$0xff]   ;;  %p4836_p0 = pneg %p4835_p5 }
 0x10c   : > { %3963 = vmatmul.mubr.msk.bf16.vlgmr.msra.gmra.mrb[8].mxu1 %vm617_vm1, %v4346_v15 }
 0x10d   : > { %1219 = vmatprep.mubr.bf16.mxu1 %v4933_v23  ;;  %p4843_p13 = pnand %p4842_p10, %p4836_p0 }
 0x1cf   : > { %v655_v24 = vpop.f32.mrb[0].mxu1 }
 0x1d0   : > { %v3948_v25 = vpop.f32.mrb[1].mxu1 }
 0x1d1   : > { %v658_v26 = vpop.f32.mrb[2].mxu1 }
 0x1d2   : > { %v662_v27 = vpack.c.bf16 %v658_v26, %v655_v24  ;;  %v3949_v28 = vpop.f32.mrb[3].mxu1 }
 0x1d7   : > { %v720_v29 = vpop.f32.mrb[4].mxu1 }
 0x1d8   : > { %v3956_v30 = vpop.f32.mrb[5].mxu1 }
 0x1d9   : > { %v723_v31 = vpop.f32.mrb[6].mxu1 }
 0x1da   : > { %v727_v33 = vpack.c.bf16 %v723_v31, %v720_v29  ;;  %v3957_v34 = vpop.f32.mrb[7].mxu1 }
 0x1db   : > { %v3639_v34 = vld [vmem:[%s5956_s4 + $0x8] sm:$0xf] }
 0x1dc   : > { %3511 = vmatmul.mubr.msk.bf16.vlgmr.msra.gmra.mrb[0].mxu0 %vm801_vm2, %v727_v33  ;;  %v1182_v33 = vld [vmem:[%s5956_s4] sm:$0xf] }
 0x1dd   : > { %912 = vmatpush1.bf16.msra.mxu0 %v4365_v32  ;;  %943 = vmatprep.mubr.bf16.mxu0 %v4933_v23 }
 0x1de   : > { %913 = vmatprep.subr.bf16.mxu0 %v4370_v35  ;;  %v4403_v35 = vld [vmem:[%s5957_s5 + $0x104] ss:$8 sps:$4 sm:$0xff]  }
 0x1df   : > { %v999_v38 = vpop.f32.mrb[8].mxu1 }
 0x1e0   : > { %v3964_v39 = vpop.f32.mrb[9].mxu1 }
 0x1e1   : > { %914 = vmatpush1.bf16.msra.mxu0 %v4368_v36  ;;  %v1002_v41 = vpop.f32.mrb[10].mxu1  ;;  %v3541_v36 = vld [vmem:[%s5956_s4 + $0x4] sm:$0xf] }
 0x1e2   : > { %915 = vmatprep.subr.bf16.mxu0 %v4373_v37  ;;  %v1006_v43 = vpack.c.bf16 %v1002_v41, %v999_v38  ;;  %v3965_v44 = vpop.f32.mrb[11].mxu1  ;;  %v4401_v37 = vld [vmem:[%s5957_s5 + $0x100] ss:$8 sps:$4 sm:$0xff]   ;;  %v4406_v38 = vld [vmem:[%s5957_s5 + $0x114] ss:$8 sps:$4 sm:$0xff]  }
 0x1e3   : > { %v4409_v39 = vld [vmem:[%s5957_s5 + $0x124] ss:$8 sps:$4 sm:$0xff]   ;;  %v4412_v41 = vld [vmem:[%s5957_s5 + $0x134] ss:$8 sps:$4 sm:$0xff]   ;;  %v4413_v44 = vld [vmem:[%s5957_s5 + $0x140] ss:$8 sps:$4 sm:$0xff]  }
 0x1e5   : > { %916 = vmatpush1.bf16.msra.mxu0 %v4371_v40  ;;  %v4407_v40 = vld [vmem:[%s5957_s5 + $0x120] ss:$8 sps:$4 sm:$0xff]  }
 0x1e6   : > { %917 = vmatprep.subr.bf16.mxu0 %v4376_v42  ;;  %v4410_v42 = vld [vmem:[%s5957_s5 + $0x130] ss:$8 sps:$4 sm:$0xff]  }
 0x1e9   : > { %918 = vmatpush1.bf16.msra.mxu0 %v4374_v45  ;;  %v4418_v45 = vld [vmem:[%s5957_s5 + $0x154] ss:$8 sps:$4 sm:$0xff]  }
 0x1ea   : > { %919 = vmatprep.subr.bf16.mxu0 %v4379_v46  ;;  %v4416_v46 = vld [vmem:[%s5957_s5 + $0x150] ss:$8 sps:$4 sm:$0xff]  }
 0x1ed   : > { %920 = vmatpush1.bf16.msra.mxu0 %v4377_v47  ;;  %v4421_v47 = vld [vmem:[%s5957_s5 + $0x164] ss:$8 sps:$4 sm:$0xff]  }
 0x1ee   : > { %921 = vmatprep.subr.bf16.mxu0 %v4382_v48  ;;  %v4419_v48 = vld [vmem:[%s5957_s5 + $0x160] ss:$8 sps:$4 sm:$0xff]  }
 0x1f1   : > { %922 = vmatpush1.bf16.msra.mxu0 %v4380_v49  ;;  %v4424_v49 = vld [vmem:[%s5957_s5 + $0x174] ss:$8 sps:$4 sm:$0xff]  }
 0x1f2   : > { %1083 = vmatprep.subr.bf16.mxu0 %v4385_v50  ;;  %v4422_v50 = vld [vmem:[%s5957_s5 + $0x170] ss:$8 sps:$4 sm:$0xff]  }
 0x1f4   : > { %3524 = vmatmul.mubr.msk.bf16.vlgmr.msra.gmra.mrb[0].mxu0 %vm801_vm2, %v662_v27 }
 0x1f5   : > { %1084 = vmatpush1.bf16.msra.mxu0 %v4383_v51  ;;  %1115 = vmatprep.mubr.bf16.mxu0 %v4933_v23  ;;  %v4427_v51 = vld [vmem:[%s5957_s5 + $0x184] ss:$8 sps:$4 sm:$0xff]  }
 0x1f6   : > { %1085 = vmatprep.subr.bf16.mxu0 %v4388_v52  ;;  %v4425_v52 = vld [vmem:[%s5957_s5 + $0x180] ss:$8 sps:$4 sm:$0xff]  }
 0x1f9   : > { %1086 = vmatpush1.bf16.msra.mxu0 %v4386_v53  ;;  %v4430_v53 = vld [vmem:[%s5957_s5 + $0x194] ss:$8 sps:$4 sm:$0xff]  }
 0x1fa   : > { %1087 = vmatprep.subr.bf16.mxu0 %v4391_v54  ;;  %v4428_v54 = vld [vmem:[%s5957_s5 + $0x190] ss:$8 sps:$4 sm:$0xff]  }
 0x1fd   : > { %1088 = vmatpush1.bf16.msra.mxu0 %v4389_v55  ;;  %v4433_v55 = vld [vmem:[%s5957_s5 + $0x1a4] ss:$8 sps:$4 sm:$0xff]  }
 0x1fe   : > { %1089 = vmatprep.subr.bf16.mxu0 %v4394_v56  ;;  %v4431_v56 = vld [vmem:[%s5957_s5 + $0x1a0] ss:$8 sps:$4 sm:$0xff]  }
 0x201   : > { %1090 = vmatpush1.bf16.msra.mxu0 %v4392_v57  ;;  %v4436_v57 = vld [vmem:[%s5957_s5 + $0x1b4] ss:$8 sps:$4 sm:$0xff]  }
 0x202   : > { %1091 = vmatprep.subr.bf16.mxu0 %v4397_v58  ;;  %v4434_v58 = vld [vmem:[%s5957_s5 + $0x1b0] ss:$8 sps:$4 sm:$0xff]  }
 0x205   : > { %1092 = vmatpush1.bf16.msra.mxu0 %v4395_v59  ;;  %v4439_v59 = vld [vmem:[%s5957_s5 + $0x1c4] ss:$8 sps:$4 sm:$0xff]  }
 0x206   : > { %1093 = vmatprep.subr.bf16.mxu0 %v4400_v60  ;;  %v4437_v60 = vld [vmem:[%s5957_s5 + $0x1c0] ss:$8 sps:$4 sm:$0xff]  }
 0x209   : > { %1094 = vmatpush1.bf16.msra.mxu0 %v4398_v61  ;;  %v4442_v61 = vld [vmem:[%s5957_s5 + $0x1d4] ss:$8 sps:$4 sm:$0xff]  }
 0x20c   : > { %3539 = vmatmul.mubr.msk.bf16.vlgmr.msra.gmra.mrb[0].mxu0 %vm801_vm2, %v1006_v43  ;;  %v4415_v43 = vld [vmem:[%s5957_s5 + $0x144] ss:$8 sps:$4 sm:$0xff]  }
 0x20d   : > { %1782 = vmatprep.mubr.bf16.mxu0 %v4933_v23 }
 0x2df   : > { %v1117_v13 = vpop.f32.mrb[0].mxu0 }
 0x2e0   : > { %v1150_v15 = vmul.f32 %v1145_v10, %v1117_v13  ;;  %v1119_v16 = vpop.f32.mrb[1].mxu0 }
 0x2e1   : > { %v1151_v17 = vmul.f32 %v1149_v11, %v1119_v16  ;;  %v1121_v18 = vpop.f32.mrb[2].mxu0 }
 0x2e2   : > { %v1172_v19 = vadd.f32 %v1167_v12, %v1150_v15  ;;  %v1152_v20 = vmul.f32 %v1145_v10, %v1121_v18  ;;  %v1123_v21 = vpop.f32.mrb[3].mxu0 }
 0x2e3   : > { %v1173_v22 = vadd.f32 %v1171_v14, %v1151_v17  ;;  %v1153_v24 = vmul.f32 %v1149_v11, %v1123_v21 }
 0x2e4   : > { %v1174_v25 = vadd.f32 %v1167_v12, %v1152_v20  ;;  %v1176_v27 = vmax.f32 %v1172_v19, 0.0 }
 0x2e5   : > { %v1175_v26 = vadd.f32 %v1171_v14, %v1153_v24  ;;  %v1177_v29 = vmax.f32 %v1173_v22, 0.0  ;;  %v4449_v22 = vld [vmem:[%s5957_s5] ss:$8 sps:$4 sm:$0xff]  }
 0x2e6   : > { %v1178_v28 = vmax.f32 %v1174_v25, 0.0 }
 0x2e7   : > { %v1179_v30 = vmax.f32 %v1175_v26, 0.0  ;;  %v4454_v26 = vld [vmem:[%s5957_s5 + $0x14] ss:$8 sps:$4 sm:$0xff]  }
 0x2e8   : > { %v1180_v31 = vpack.c.bf16 %v1178_v28, %v1176_v27  ;;  %v4452_v28 = vld [vmem:[%s5957_s5 + $0x10] ss:$8 sps:$4 sm:$0xff]  }
 0x2e9   : > { %v1181_v32 = vpack.c.bf16 %v1179_v30, %v1177_v29  ;;  %v4457_v29 = vld [vmem:[%s5957_s5 + $0x24] ss:$8 sps:$4 sm:$0xff]   ;;  %v4455_v30 = vld [vmem:[%s5957_s5 + $0x20] ss:$8 sps:$4 sm:$0xff]  }
 0x2eb   : > { %1187 = vmatprep.subr.bf16.mxu1 %v1181_v32  ;;  %1750 = vmatprep.subr.bf16.mxu0 %v1181_v32 }
 0x2ec   : > { %1188 = vmatpush1.bf16.msra.mxu1 %v1180_v31  ;;  %1751 = vmatpush1.bf16.msra.mxu0 %v1180_v31 }
 0x2ed   : > { %1267 = vmatprep.subr.bf16.mxu1 %v1181_v32  ;;  %3966 = vmatprep.subr.bf16.mxu0 %v4931_v0  ;;  %v4458_v32 = vld [vmem:[%s5957_s5 + $0x30] ss:$8 sps:$4 sm:$0xff]  }
 0x2ef   : > { %3540 = vmatmul.mubr.msk.bf16.vlgmr.msra.gmra.mrb[12].mxu1 %vm1183_vm3, %v1182_v33  ;;  %3640 = vmatmul.mubr.msk.bf16.vlgmr.msra.gmra.mrb[4].mxu0 %vm1183_vm3, %v3639_v34  ;;  %v4463_v33 = vld [vmem:[%s5957_s5 + $0x44] ss:$8 sps:$4 sm:$0xff]   ;;  %v4461_v34 = vld [vmem:[%s5957_s5 + $0x40] ss:$8 sps:$4 sm:$0xff]  }
 0x2f0   : > { %1268 = vmatpush1.bf16.msra.mxu1 %v1180_v31  ;;  %1299 = vmatprep.mubr.bf16.mxu1 %v4933_v23  ;;  %v4404_v23 = vld [vmem:[%s5957_s5 + $0x110] ss:$8 sps:$4 sm:$0xff]   ;;  %v4460_v31 = vld [vmem:[%s5957_s5 + $0x34] ss:$8 sps:$4 sm:$0xff]  }
 0x2f1   : > { %1503 = vmatprep.subr.bf16.mxu1 %v4403_v35  ;;  %3968 = vmatprep.mubr.msk.bf16.mxu0 %vm4932_vm0, %v4931_v0  ;;  %v4466_v35 = vld [vmem:[%s5957_s5 + $0x54] ss:$8 sps:$4 sm:$0xff]  }
 0x2f7   : > { %3542 = vmatmul.mubr.msk.bf16.vlgmr.msra.gmra.mrb[16].mxu1 %vm1183_vm3, %v3541_v36  ;;  %v4464_v36 = vld [vmem:[%s5957_s5 + $0x50] ss:$8 sps:$4 sm:$0xff]  }
 0x2f8   : > { %1504 = vmatpush1.bf16.msra.mxu1 %v4401_v37  ;;  %v4469_v37 = vld [vmem:[%s5957_s5 + $0x64] ss:$8 sps:$4 sm:$0xff]  }
 0x2f9   : > { %1505 = vmatprep.subr.bf16.mxu1 %v4406_v38  ;;  %v4467_v38 = vld [vmem:[%s5957_s5 + $0x60] ss:$8 sps:$4 sm:$0xff]  }
 0x2fc   : > { %1506 = vmatpush1.bf16.msra.mxu1 %v4404_v23  ;;  %v4472_v23 = vld [vmem:[%s5957_s5 + $0x74] ss:$8 sps:$4 sm:$0xff]  }
 0x2fd   : > { %1507 = vmatprep.subr.bf16.mxu1 %v4409_v39  ;;  %v4470_v39 = vld [vmem:[%s5957_s5 + $0x70] ss:$8 sps:$4 sm:$0xff]  }
 0x300   : > { %1508 = vmatpush1.bf16.msra.mxu1 %v4407_v40  ;;  %v4475_v40 = vld [vmem:[%s5957_s5 + $0x84] ss:$8 sps:$4 sm:$0xff]  }
 0x301   : > { %1509 = vmatprep.subr.bf16.mxu1 %v4412_v41  ;;  %v4473_v41 = vld [vmem:[%s5957_s5 + $0x80] ss:$8 sps:$4 sm:$0xff]  }
 0x304   : > { %1510 = vmatpush1.bf16.msra.mxu1 %v4410_v42  ;;  %v4478_v42 = vld [vmem:[%s5957_s5 + $0x94] ss:$8 sps:$4 sm:$0xff]  }
 0x305   : > { %1511 = vmatprep.subr.bf16.mxu1 %v4415_v43  ;;  %v4476_v43 = vld [vmem:[%s5957_s5 + $0x90] ss:$8 sps:$4 sm:$0xff]  }
 0x308   : > { %1512 = vmatpush1.bf16.msra.mxu1 %v4413_v44  ;;  %v4481_v44 = vld [vmem:[%s5957_s5 + $0xa4] ss:$8 sps:$4 sm:$0xff]  }
 0x309   : > { %1513 = vmatprep.subr.bf16.mxu1 %v4418_v45  ;;  %v4479_v45 = vld [vmem:[%s5957_s5 + $0xa0] ss:$8 sps:$4 sm:$0xff]  }
 0x30c   : > { %1514 = vmatpush1.bf16.msra.mxu1 %v4416_v46  ;;  %v4484_v46 = vld [vmem:[%s5957_s5 + $0xb4] ss:$8 sps:$4 sm:$0xff]  }
 0x30d   : > { %1515 = vmatprep.subr.bf16.mxu1 %v4421_v47  ;;  %v4482_v47 = vld [vmem:[%s5957_s5 + $0xb0] ss:$8 sps:$4 sm:$0xff]  }
 0x310   : > { %1516 = vmatpush1.bf16.msra.mxu1 %v4419_v48  ;;  %v4487_v48 = vld [vmem:[%s5957_s5 + $0xc4] ss:$8 sps:$4 sm:$0xff]  }
 0x311   : > { %1517 = vmatprep.subr.bf16.mxu1 %v4424_v49  ;;  %v4485_v49 = vld [vmem:[%s5957_s5 + $0xc0] ss:$8 sps:$4 sm:$0xff]  }
 0x314   : > { %1518 = vmatpush1.bf16.msra.mxu1 %v4422_v50  ;;  %v4490_v50 = vld [vmem:[%s5957_s5 + $0xd4] ss:$8 sps:$4 sm:$0xff]  }
 0x315   : > { %1519 = vmatprep.subr.bf16.mxu1 %v4427_v51  ;;  %v4488_v51 = vld [vmem:[%s5957_s5 + $0xd0] ss:$8 sps:$4 sm:$0xff]  }
 0x318   : > { %1520 = vmatpush1.bf16.msra.mxu1 %v4425_v52  ;;  %v4493_v52 = vld [vmem:[%s5957_s5 + $0xe4] ss:$8 sps:$4 sm:$0xff]  }
 0x319   : > { %1521 = vmatprep.subr.bf16.mxu1 %v4430_v53  ;;  %v4491_v53 = vld [vmem:[%s5957_s5 + $0xe0] ss:$8 sps:$4 sm:$0xff]  }
 0x31c   : > { %1522 = vmatpush1.bf16.msra.mxu1 %v4428_v54  ;;  %v4496_v54 = vld [vmem:[%s5957_s5 + $0xf4] ss:$8 sps:$4 sm:$0xff]  }
 0x31d   : > { %1523 = vmatprep.subr.bf16.mxu1 %v4433_v55  ;;  %v4494_v55 = vld [vmem:[%s5957_s5 + $0xf0] ss:$8 sps:$4 sm:$0xff]  }
 0x320   : > { %1524 = vmatpush1.bf16.msra.mxu1 %v4431_v56  ;;  %v4499_v56 = vld [vmem:[%s5957_s5 + $0x204] ss:$8 sps:$4 sm:$0xff]  }
 0x321   : > { %1525 = vmatprep.subr.bf16.mxu1 %v4436_v57  ;;  %v4497_v57 = vld [vmem:[%s5957_s5 + $0x200] ss:$8 sps:$4 sm:$0xff]  }
 0x324   : > { %1526 = vmatpush1.bf16.msra.mxu1 %v4434_v58 }
 0x325   : > { %1527 = vmatprep.subr.bf16.mxu1 %v4439_v59 }
 0x328   : > { %1528 = vmatpush1.bf16.msra.mxu1 %v4437_v60  ;;  %v4502_v60 = vld [vmem:[%s5957_s5 + $0x214] ss:$8 sps:$4 sm:$0xff]  }
 0x329   : > { %1529 = vmatprep.subr.bf16.mxu1 %v4442_v61  ;;  %v4500_v61 = vld [vmem:[%s5957_s5 + $0x210] ss:$8 sps:$4 sm:$0xff]  }
 0x32c   : > { %1530 = vmatpush1.bf16.msra.mxu1 %v4440_v62  ;;  %v4505_v62 = vld [vmem:[%s5957_s5 + $0x224] ss:$8 sps:$4 sm:$0xff]  }
 0x32d   : > { %1531 = vmatprep.subr.bf16.mxu1 %v4445_v2  ;;  %v4503_v2 = vld [vmem:[%s5957_s5 + $0x220] ss:$8 sps:$4 sm:$0xff]  }
 0x330   : > { %1532 = vmatpush1.bf16.msra.mxu1 %v4443_v6  ;;  %v4508_v6 = vld [vmem:[%s5957_s5 + $0x234] ss:$8 sps:$4 sm:$0xff]  }
 0x331   : > { %1533 = vmatprep.subr.bf16.mxu1 %v4448_v7  ;;  %v4506_v7 = vld [vmem:[%s5957_s5 + $0x230] ss:$8 sps:$4 sm:$0xff]  }
 0x334   : > { %1534 = vmatpush1.bf16.msra.mxu1 %v4446_v8  ;;  %v4511_v8 = vld [vmem:[%s5957_s5 + $0x244] ss:$8 sps:$4 sm:$0xff]  }
 0x335   : > { %1704 = vmatprep.subr.bf16.mxu1 %v4451_v9  ;;  %v4509_v9 = vld [vmem:[%s5957_s5 + $0x240] ss:$8 sps:$4 sm:$0xff]  }
 0x3c2   : > { %v5420_v10 = vpop.f32.mrb[12].mxu1  ;;  %v5422_v13 = vpop.f32.mrb[4].mxu0 }
 0x3c3   : > { %v1223_v11 = vpop.f32.mrb[13].mxu1  ;;  %v5424_v15 = vpop.f32.mrb[5].mxu0  ;;  %v1228_v59 = vpack.c.bf16 %v5420_v10, %v5420_v10  ;;  %v4514_v10 = vld [vmem:[%s5957_s5 + $0x254] ss:$8 sps:$4 sm:$0xff]  }
 0x3c4   : > { %v1225_v12 = vpop.f32.mrb[14].mxu1  ;;  %v1788_v16 = vpop.f32.mrb[6].mxu0  ;;  %v1229_v27 = vpack.c.bf16 %v1223_v11, %v1223_v11  ;;  %v1792_v58 = vpack.c.bf16 %v5424_v15, %v5424_v15  ;;  %v4512_v11 = vld [vmem:[%s5957_s5 + $0x250] ss:$8 sps:$4 sm:$0xff]   ;;  %v4520_v15 = vld [vmem:[%s5957_s5 + $0x274] ss:$8 sps:$4 sm:$0xff]  }
 0x3c5   : > { %v1226_v14 = vpop.f32.mrb[15].mxu1  ;;  %v1789_v17 = vpop.f32.mrb[7].mxu0  ;;  %v4517_v12 = vld [vmem:[%s5957_s5 + $0x264] ss:$8 sps:$4 sm:$0xff]   ;;  %v4518_v16 = vld [vmem:[%s5957_s5 + $0x270] ss:$8 sps:$4 sm:$0xff]  }
 0x3c6   : > { %v4515_v14 = vld [vmem:[%s5957_s5 + $0x260] ss:$8 sps:$4 sm:$0xff]   ;;  %v4523_v17 = vld [vmem:[%s5957_s5 + $0x284] ss:$8 sps:$4 sm:$0xff]  }
 0x3ca   : > { %v1301_v18 = vpop.f32.mrb[16].mxu1 }
 0x3cb   : > { %v1303_v19 = vpop.f32.mrb[17].mxu1  ;;  %v1308_v24 = vpack.c.bf16 %v1301_v18, %v1301_v18  ;;  %v4521_v18 = vld [vmem:[%s5957_s5 + $0x280] ss:$8 sps:$4 sm:$0xff]  }
 0x3cc   : > { %v1309_v20 = vpack.c.bf16 %v1303_v19, %v1303_v19  ;;  %v1305_v21 = vpop.f32.mrb[18].mxu1  ;;  %v4526_v19 = vld [vmem:[%s5957_s5 + $0x294] ss:$8 sps:$4 sm:$0xff]  }
 0x3cd   : > { %v1306_v25 = vpop.f32.mrb[19].mxu1  ;;  %v4529_v21 = vld [vmem:[%s5957_s5 + $0x2a4] ss:$8 sps:$4 sm:$0xff]  }
 0x3ce   : > { %1535 = vmatprep.mubr.bf16.mxu1 %v1309_v20  ;;  %v4524_v20 = vld [vmem:[%s5957_s5 + $0x290] ss:$8 sps:$4 sm:$0xff]  }
 0x3cf   : > { %1536 = vmatmul.mubr.bf16.vlgmr.msra.gmra.mrb[20].mxu1 %v1308_v24  ;;  %v4532_v24 = vld [vmem:[%s5957_s5 + $0x2b4] ss:$8 sps:$4 sm:$0xff]   ;;  %v4530_v25 = vld [vmem:[%s5957_s5 + $0x2b0] ss:$8 sps:$4 sm:$0xff]  }
 0x3d0   : > { %1705 = vmatpush1.bf16.msra.mxu1 %v4449_v22  ;;  %1736 = vmatprep.mubr.bf16.mxu1 %v1229_v27  ;;  %v4527_v22 = vld [vmem:[%s5957_s5 + $0x2a0] ss:$8 sps:$4 sm:$0xff]  }
 0x3d1   : > { %1706 = vmatprep.subr.bf16.mxu1 %v4454_v26  ;;  %v4535_v26 = vld [vmem:[%s5957_s5 + $0x2c4] ss:$8 sps:$4 sm:$0xff]   ;;  %v4533_v27 = vld [vmem:[%s5957_s5 + $0x2c0] ss:$8 sps:$4 sm:$0xff]  }
 0x3d4   : > { %1707 = vmatpush1.bf16.msra.mxu1 %v4452_v28  ;;  %v4538_v28 = vld [vmem:[%s5957_s5 + $0x2d4] ss:$8 sps:$4 sm:$0xff]  }
 0x3d5   : > { %1708 = vmatprep.subr.bf16.mxu1 %v4457_v29  ;;  %v4536_v29 = vld [vmem:[%s5957_s5 + $0x2d0] ss:$8 sps:$4 sm:$0xff]  }
 0x3d8   : > { %1709 = vmatpush1.bf16.msra.mxu1 %v4455_v30  ;;  %v4541_v30 = vld [vmem:[%s5957_s5 + $0x2e4] ss:$8 sps:$4 sm:$0xff]  }
 0x3d9   : > { %1710 = vmatprep.subr.bf16.mxu1 %v4460_v31  ;;  %v4539_v31 = vld [vmem:[%s5957_s5 + $0x2e0] ss:$8 sps:$4 sm:$0xff]  }
 0x3dc   : > { %1711 = vmatpush1.bf16.msra.mxu1 %v4458_v32  ;;  %v4544_v32 = vld [vmem:[%s5957_s5 + $0x2f4] ss:$8 sps:$4 sm:$0xff]  }
 0x3dd   : > { %1712 = vmatprep.subr.bf16.mxu1 %v4463_v33  ;;  %v4542_v33 = vld [vmem:[%s5957_s5 + $0x2f0] ss:$8 sps:$4 sm:$0xff]  }
 0x3e0   : > { %1713 = vmatpush1.bf16.msra.mxu1 %v4461_v34  ;;  %v1791_v34 = vpack.c.bf16 %v5422_v13, %v5422_v13 }
 0x3e1   : > { %1714 = vmatprep.subr.bf16.mxu1 %v4466_v35  ;;  %v2029_v35 = vld [vmem:[#allocation7] sm:$0xf] }
 0x3e4   : > { %1715 = vmatpush1.bf16.msra.mxu1 %v4464_v36  ;;  %v2034_v36 = vrot.slane %v2029_v35, %v5288_v1 }
 0x3e5   : > { %1716 = vmatprep.subr.bf16.mxu1 %v4469_v37  ;;  %v2038_v37 = vrot.slane %v2029_v35, %v1138_v3 }
 0x3e7   : > { %v2048_v13 = vrot.slane %v2038_v37, %v5288_v1 }
 0x3e8   : > { %1717 = vmatpush1.bf16.msra.mxu1 %v4467_v38  ;;  %v2054_v38 = vrot.slane %v2029_v35, %v5295_v4 }
 0x3e9   : > { %1718 = vmatprep.subr.bf16.mxu1 %v4472_v23  ;;  %v2058_v23 = vrot.slane %v2029_v35, %v1160_v5 }
 0x3ec   : > { %1719 = vmatpush1.bf16.msra.mxu1 %v4470_v39  ;;  %v2044_v39 = vrot.slane %v2034_v36, %v5288_v1  ;;  %v2530_v36 = vld [vmem:[#allocation10] sm:$0x3] }
 0x3ed   : > { %1720 = vmatprep.subr.bf16.mxu1 %v4475_v40  ;;  %v2064_v40 = vrot.slane %v2054_v38, %v5295_v4  ;;  %v2534_v37 = vrot.slane %v2530_v36, %v5288_v1  ;;  %v2539_v38 = vrot.slane %v2530_v36, %v5295_v4 }
 0x3f0   : > { %1721 = vmatpush1.bf16.msra.mxu1 %v4473_v41 }
 0x3f1   : > { %1722 = vmatprep.subr.bf16.mxu1 %v4478_v42  ;;  %v2068_v42 = vrot.slane %v2058_v23, %v5295_v4 }
 0x3f4   : > { %1723 = vmatpush1.bf16.msra.mxu1 %v4476_v43 }
 0x3f5   : > { %1724 = vmatprep.subr.bf16.mxu1 %v4481_v44 }
 0x3f8   : > { %1725 = vmatpush1.bf16.msra.mxu1 %v4479_v45 }
 0x3f9   : > { %1726 = vmatprep.subr.bf16.mxu1 %v4484_v46 }
 0x3fc   : > { %1727 = vmatpush1.bf16.msra.mxu1 %v4482_v47 }
 0x3fd   : > { %1728 = vmatprep.subr.bf16.mxu1 %v4487_v48 }
 0x400   : > { %1729 = vmatpush1.bf16.msra.mxu1 %v4485_v49 }
 0x401   : > { %1730 = vmatprep.subr.bf16.mxu1 %v4490_v50  ;;  %v2073_v50 = vld [vmem:[#allocation8] sm:$0xf] }
 0x404   : > { %1731 = vmatpush1.bf16.msra.mxu1 %v4488_v51  ;;  %v2140_v51 = vld [vmem:[#allocation8 + $0x4] sm:$0xf] }
 0x405   : > { %1732 = vmatprep.subr.bf16.mxu1 %v4493_v52  ;;  %v4545_v52 = vld [vmem:[%s6019_s21 + $0x40] sm:$0xff]  }
 0x408   : > { %1733 = vmatpush1.bf16.msra.mxu1 %v4491_v53  ;;  %v4546_v53 = vld [vmem:[%s6020_s24 + $0x48] sm:$0xff]  }
 0x409   : > { %1734 = vmatprep.subr.bf16.mxu1 %v4496_v54  ;;  %v4547_v54 = vld [vmem:[%s6020_s24 + $0x50] sm:$0xff]  }
 0x40c   : > { %1735 = vmatpush1.bf16.msra.mxu1 %v4494_v55  ;;  %v4548_v55 = vld [vmem:[%s6020_s24 + $0x58] sm:$0xff]  }
 0x40d   : > { %1986 = vmatprep.subr.bf16.mxu1 %v4499_v56  ;;  %v4549_v56 = vld [vmem:[%s6020_s24 + $0x60] sm:$0xff]  }
 0x40f   : > { %1737 = vmatmul.mubr.bf16.vlgmr.msra.gmra.mrb[20].mxu1 %v1228_v59  ;;  %v4552_v59 = vld [vmem:[%s6020_s24 + $0x78] sm:$0xff]  }
 0x410   : > { %1987 = vmatpush1.bf16.msra.mxu1 %v4497_v57  ;;  %2018 = vmatprep.mubr.bf16.mxu1 %v1792_v58  ;;  %v4550_v57 = vld [vmem:[%s6020_s24 + $0x68] sm:$0xff]   ;;  %v4551_v58 = vld [vmem:[%s6020_s24 + $0x70] sm:$0xff]  }
 0x411   : > { %1988 = vmatprep.subr.bf16.mxu1 %v4502_v60 }
 0x414   : > { %1989 = vmatpush1.bf16.msra.mxu1 %v4500_v61 }
 0x415   : > { %1990 = vmatprep.subr.bf16.mxu1 %v4505_v62 }
 0x418   : > { %1991 = vmatpush1.bf16.msra.mxu1 %v4503_v2 }
 0x419   : > { %1992 = vmatprep.subr.bf16.mxu1 %v4508_v6 }
 0x41c   : > { %1993 = vmatpush1.bf16.msra.mxu1 %v4506_v7  ;;  %v4553_v7 = vld [vmem:[%s6020_s24] sm:$0xff]  }
 0x41d   : > { %1994 = vmatprep.subr.bf16.mxu1 %v4511_v8 }
 0x420   : > { %1995 = vmatpush1.bf16.msra.mxu1 %v4509_v9 }
 0x421   : > { %1996 = vmatprep.subr.bf16.mxu1 %v4514_v10 }
 0x424   : > { %1997 = vmatpush1.bf16.msra.mxu1 %v4512_v11 }
 0x425   : > { %1998 = vmatprep.subr.bf16.mxu1 %v4517_v12  ;;  %v4554_v12 = vld [vmem:[%s6020_s24 + $0x8] sm:$0xff]  }
 0x428   : > { %1999 = vmatpush1.bf16.msra.mxu1 %v4515_v14  ;;  %v4555_v14 = vld [vmem:[%s6020_s24 + $0x10] sm:$0xff]  }
 0x429   : > { %2000 = vmatprep.subr.bf16.mxu1 %v4520_v15  ;;  %v4556_v15 = vld [vmem:[%s6020_s24 + $0x18] sm:$0xff]  }
 0x42c   : > { %2001 = vmatpush1.bf16.msra.mxu1 %v4518_v16  ;;  %v4557_v16 = vld [vmem:[%s6020_s24 + $0x20] sm:$0xff]  }
 0x42d   : > { %2002 = vmatprep.subr.bf16.mxu1 %v4523_v17  ;;  %v4558_v17 = vld [vmem:[%s6020_s24 + $0x28] sm:$0xff]  }
 0x430   : > { %2003 = vmatpush1.bf16.msra.mxu1 %v4521_v18  ;;  %v4559_v18 = vld [vmem:[%s6020_s24 + $0x30] sm:$0xff]  }
 0x431   : > { %2004 = vmatprep.subr.bf16.mxu1 %v4526_v19  ;;  %v4560_v19 = vld [vmem:[%s6020_s24 + $0x38] sm:$0xff]  }
 0x434   : > { %2005 = vmatpush1.bf16.msra.mxu1 %v4524_v20 }
 0x435   : > { %2006 = vmatprep.subr.bf16.mxu1 %v4529_v21  ;;  %v2379_v21 = vld [vmem:[#allocation8 + $0x8] sm:$0xf] }
 0x438   : > { %2007 = vmatpush1.bf16.msra.mxu1 %v4527_v22  ;;  %v4561_v22 = vld [vmem:[%s6020_s24 + $0x80] sm:$0xff]  }
 0x439   : > { %2008 = vmatprep.subr.bf16.mxu1 %v4532_v24  ;;  %v4562_v24 = vld [vmem:[%s6020_s24 + $0x88] sm:$0xff]  }
 0x43c   : > { %2009 = vmatpush1.bf16.msra.mxu1 %v4530_v25  ;;  %v4563_v25 = vld [vmem:[%s6020_s24 + $0x90] sm:$0xff]  }
 0x43d   : > { %2010 = vmatprep.subr.bf16.mxu1 %v4535_v26  ;;  %v4564_v26 = vld [vmem:[%s6020_s24 + $0x98] sm:$0xff]  }
 0x440   : > { %2011 = vmatpush1.bf16.msra.mxu1 %v4533_v27  ;;  %v4565_v27 = vld [vmem:[%s6020_s24 + $0xa0] sm:$0xff]  }
 0x441   : > { %2012 = vmatprep.subr.bf16.mxu1 %v4538_v28  ;;  %v4566_v28 = vld [vmem:[%s6020_s24 + $0xa8] sm:$0xff]  }
 0x444   : > { %2013 = vmatpush1.bf16.msra.mxu1 %v4536_v29  ;;  %v4567_v29 = vld [vmem:[%s6020_s24 + $0xb0] sm:$0xff]  }
 0x445   : > { %2014 = vmatprep.subr.bf16.mxu1 %v4541_v30  ;;  %v4568_v30 = vld [vmem:[%s6020_s24 + $0xb8] sm:$0xff]  }
 0x448   : > { %2015 = vmatpush1.bf16.msra.mxu1 %v4539_v31 }
 0x449   : > { %2016 = vmatprep.subr.bf16.mxu1 %v4544_v32 }
 0x44c   : > { %2017 = vmatpush1.bf16.msra.mxu1 %v4542_v33 }
 0x44d   : > { %4096 = vmatprep.subr.bf16.mxu1 %v4931_v0 }
 0x44f   : > { %2019 = vmatmul.mubr.bf16.vlgmr.msra.gmra.mrb[20].mxu1 %v1791_v34 }
 0x450   : > { %4098 = vmatprep.mubr.msk.bf16.mxu1 %vm4932_vm0, %v4931_v0 }
 0x522   : > { %v2020_v41 = vpop.f32.mrb[20].mxu1 }
 0x523   : > { %v2049_v43 = vmul.f32 %v2044_v39, %v2020_v41  ;;  %v2022_v44 = vpop.f32.mrb[21].mxu1 }
 0x524   : > { %v2050_v45 = vmul.f32 %v2048_v13, %v2022_v44  ;;  %v2024_v46 = vpop.f32.mrb[22].mxu1 }
 0x525   : > { %v2069_v47 = vadd.f32 %v2064_v40, %v2049_v43  ;;  %v2025_v3 = vpop.f32.mrb[23].mxu1 }
 0x526   : > { %v5634_v48 = vadd.f32 %v2068_v42, %v2050_v45  ;;  %v2848_v3 = vld [vmem:[#allocation11 + $0x4] sm:$0x3] }
 0x527   : > { %v2071_v49 = vmax.f32 %v2069_v47, 0.0  ;;  %v2544_v47 = vld [vmem:[#allocation11] sm:$0x3] }
 0x529   : > { %v2072_v63 = vpack.c.bf16 %v2071_v49, %v2071_v49  ;;  %v4569_v49 = vld [vmem:[%s6021_s8 + $0x40] sm:$0xff]  }
 0x52b   : > { %v5637_v5 = vsel %vm2078_vm4, %v2072_v63, 0  ;;  %v4570_v63 = vld [vmem:[%s6021_s8 + $0x48] sm:$0xff]  }
 0x52c   : > { %3967 = vmatpush3.bf16.msra.mxu0 %v5637_v5 }
 0x52d   : > { %3972 = vmatprep.subr.bf16.mxu0 %v4931_v0 }
 0x52f   : > { %3969 = vmatmul.mubr.msk.bf16.vlgmr.msra.gmra.mrb[8].mxu0 %vm2074_vm5, %v2073_v50  ;;  %v4572_v50 = vld [vmem:[%s6021_s8 + $0x58] sm:$0xff]  }
 0x530   : > { %3973 = vmatpush3.bf16.msra.mxu0 %v5637_v5  ;;  %3974 = vmatprep.mubr.msk.bf16.mxu0 %vm4932_vm0, %v4931_v0 }
 0x531   : > { %3978 = vmatprep.subr.bf16.mxu0 %v4931_v0 }
 0x537   : > { %3975 = vmatmul.mubr.msk.bf16.vlgmr.msra.gmra.mrb[12].mxu0 %vm2074_vm5, %v2140_v51  ;;  %v4573_v51 = vld [vmem:[%s6021_s8 + $0x60] sm:$0xff]  }
 0x538   : > { %3979 = vmatpush3.bf16.msra.mxu0 %v4545_v52  ;;  %3994 = vmatprep.mubr.msk.bf16.mxu0 %vm4932_vm0, %v4931_v0  ;;  %v4574_v52 = vld [vmem:[%s6021_s8 + $0x68] sm:$0xff]  }
 0x539   : > { %3980 = vmatprep.subr.bf16.mxu0 %v4931_v0 }
 0x53c   : > { %3981 = vmatpush3.bf16.msra.mxu0 %v4546_v53  ;;  %v4575_v53 = vld [vmem:[%s6021_s8 + $0x70] sm:$0xff]  }
 0x53d   : > { %3982 = vmatprep.subr.bf16.mxu0 %v4931_v0 }
 0x540   : > { %3983 = vmatpush3.bf16.msra.mxu0 %v4547_v54  ;;  %v4576_v54 = vld [vmem:[%s6021_s8 + $0x78] sm:$0xff]  }
 0x541   : > { %3984 = vmatprep.subr.bf16.mxu0 %v4931_v0 }
 0x544   : > { %3985 = vmatpush3.bf16.msra.mxu0 %v4548_v55  ;;  %v4593_v55 = vld [vmem:[#allocation14] sm:$0xff]  }
 0x545   : > { %3986 = vmatprep.subr.bf16.mxu0 %v4931_v0 }
 0x548   : > { %3987 = vmatpush3.bf16.msra.mxu0 %v4549_v56  ;;  %v4594_v56 = vld [vmem:[#allocation14 + $0x8] sm:$0xff]  }
 0x549   : > { %3988 = vmatprep.subr.bf16.mxu0 %v4931_v0 }
 0x54c   : > { %3989 = vmatpush3.bf16.msra.mxu0 %v4550_v57  ;;  %v4595_v57 = vld [vmem:[#allocation14 + $0x10] sm:$0xff]  }
 0x54d   : > { %3990 = vmatprep.subr.bf16.mxu0 %v4931_v0 }
 0x550   : > { %3991 = vmatpush3.bf16.msra.mxu0 %v4551_v58 }
 0x551   : > { %3992 = vmatprep.subr.bf16.mxu0 %v4931_v0 }
 0x554   : > { %3993 = vmatpush3.bf16.msra.mxu0 %v4552_v59 }
 0x555   : > { %3998 = vmatprep.subr.bf16.mxu0 %v4931_v0 }
 0x602   : > { %v2116_v60 = vpop.f32.mrb[8].mxu0 }
 0x603   : > { %v3970_v61 = vpop.f32.mrb[9].mxu0  ;;  %v2122_v20 = vpack.c.bf16 %v2116_v60, %v2116_v60 }
 0x604   : > { %v2119_v62 = vpop.f32.mrb[10].mxu0 }
 0x605   : > { %v3971_v2 = vpop.f32.mrb[11].mxu0 }
 0x60a   : > { %v2178_v6 = vpop.f32.mrb[12].mxu0 }
 0x60b   : > { %v2184_v8 = vpack.c.bf16 %v2178_v6, %v2178_v6  ;;  %v3976_v9 = vpop.f32.mrb[13].mxu0 }
 0x60c   : > { %v2181_v10 = vpop.f32.mrb[14].mxu0  ;;  %v4577_v9 = vld [vmem:[%s6021_s8] sm:$0xff]  }
 0x60d   : > { %v3977_v11 = vpop.f32.mrb[15].mxu0  ;;  %3995 = vmatmul.mubr.bf16.vlgmr.msra.gmra.mrb[16].mxu0 %v2184_v8 }
 0x60e   : > { %3999 = vmatpush3.bf16.msra.mxu0 %v4553_v7  ;;  %4014 = vmatprep.mubr.msk.bf16.mxu0 %vm4932_vm0, %v4931_v0 }
 0x60f   : > { %4000 = vmatprep.subr.bf16.mxu0 %v4931_v0 }
 0x612   : > { %4001 = vmatpush3.bf16.msra.mxu0 %v4554_v12 }
 0x613   : > { %4002 = vmatprep.subr.bf16.mxu0 %v4931_v0 }
 0x616   : > { %4003 = vmatpush3.bf16.msra.mxu0 %v4555_v14 }
 0x617   : > { %4004 = vmatprep.subr.bf16.mxu0 %v4931_v0 }
 0x61a   : > { %4005 = vmatpush3.bf16.msra.mxu0 %v4556_v15  ;;  %v4578_v15 = vld [vmem:[%s6021_s8 + $0x8] sm:$0xff]  }
 0x61b   : > { %4006 = vmatprep.subr.bf16.mxu0 %v4931_v0 }
 0x61e   : > { %4007 = vmatpush3.bf16.msra.mxu0 %v4557_v16  ;;  %v4579_v16 = vld [vmem:[%s6021_s8 + $0x10] sm:$0xff]  }
 0x61f   : > { %4008 = vmatprep.subr.bf16.mxu0 %v4931_v0 }
 0x622   : > { %4009 = vmatpush3.bf16.msra.mxu0 %v4558_v17  ;;  %v4580_v17 = vld [vmem:[%s6021_s8 + $0x18] sm:$0xff]  }
 0x623   : > { %4010 = vmatprep.subr.bf16.mxu0 %v4931_v0 }
 0x626   : > { %4011 = vmatpush3.bf16.msra.mxu0 %v4559_v18  ;;  %v4581_v18 = vld [vmem:[%s6021_s8 + $0x20] sm:$0xff]  }
 0x627   : > { %4012 = vmatprep.subr.bf16.mxu0 %v4931_v0 }
 0x62a   : > { %4013 = vmatpush3.bf16.msra.mxu0 %v4560_v19  ;;  %v4582_v19 = vld [vmem:[%s6021_s8 + $0x28] sm:$0xff]  }
 0x62b   : > { %4018 = vmatprep.subr.bf16.mxu0 %v4931_v0 }
 0x62d   : > { %4015 = vmatmul.mubr.bf16.vlgmr.msra.gmra.mrb[16].mxu0 %v2122_v20  ;;  %v4583_v20 = vld [vmem:[%s6021_s8 + $0x30] sm:$0xff]  }
 0x62e   : > { %4019 = vmatpush3.bf16.msra.mxu0 %v5637_v5  ;;  %4020 = vmatprep.mubr.msk.bf16.mxu0 %vm4932_vm0, %v4931_v0  ;;  %v4571_v5 = vld [vmem:[%s6021_s8 + $0x50] sm:$0xff]  }
 0x62f   : > { %4024 = vmatprep.subr.bf16.mxu0 %v4931_v0 }
 0x635   : > { %4021 = vmatmul.mubr.msk.bf16.vlgmr.msra.gmra.mrb[20].mxu0 %vm2074_vm5, %v2379_v21  ;;  %v4584_v21 = vld [vmem:[%s6021_s8 + $0x38] sm:$0xff]  }
 0x636   : > { %4025 = vmatpush3.bf16.msra.mxu0 %v4561_v22  ;;  %4040 = vmatprep.mubr.msk.bf16.mxu0 %vm4932_vm0, %v4931_v0  ;;  %v4585_v22 = vld [vmem:[%s6021_s8 + $0x80] sm:$0xff]  }
 0x637   : > { %4026 = vmatprep.subr.bf16.mxu0 %v4931_v0 }
 0x63a   : > { %4027 = vmatpush3.bf16.msra.mxu0 %v4562_v24 }
 0x63b   : > { %4028 = vmatprep.subr.bf16.mxu0 %v4931_v0 }
 0x63e   : > { %4029 = vmatpush3.bf16.msra.mxu0 %v4563_v25  ;;  %v4586_v25 = vld [vmem:[%s6021_s8 + $0x88] sm:$0xff]  }
 0x63f   : > { %4030 = vmatprep.subr.bf16.mxu0 %v4931_v0 }
 0x642   : > { %4031 = vmatpush3.bf16.msra.mxu0 %v4564_v26  ;;  %v4587_v26 = vld [vmem:[%s6021_s8 + $0x90] sm:$0xff]  }
 0x643   : > { %4032 = vmatprep.subr.bf16.mxu0 %v4931_v0 }
 0x646   : > { %4033 = vmatpush3.bf16.msra.mxu0 %v4565_v27  ;;  %v4588_v27 = vld [vmem:[%s6021_s8 + $0x98] sm:$0xff]  }
 0x647   : > { %4034 = vmatprep.subr.bf16.mxu0 %v4931_v0 }
 0x64a   : > { %4035 = vmatpush3.bf16.msra.mxu0 %v4566_v28  ;;  %v4589_v28 = vld [vmem:[%s6021_s8 + $0xa0] sm:$0xff]  }
 0x64b   : > { %4036 = vmatprep.subr.bf16.mxu0 %v4931_v0 }
 0x64e   : > { %4037 = vmatpush3.bf16.msra.mxu0 %v4567_v29  ;;  %v4590_v29 = vld [vmem:[%s6021_s8 + $0xa8] sm:$0xff]  }
 0x64f   : > { %4038 = vmatprep.subr.bf16.mxu0 %v4931_v0 }
 0x652   : > { %4039 = vmatpush3.bf16.msra.mxu0 %v4568_v30  ;;  %v4591_v30 = vld [vmem:[%s6021_s8 + $0xb0] sm:$0xff]  }
 0x653   : > { %4044 = vmatprep.subr.bf16.mxu0 %v4931_v0 }
 0x708   : > { %v2417_v31 = vpop.f32.mrb[20].mxu0 }
 0x709   : > { %v2423_v32 = vpack.c.bf16 %v2417_v31, %v2417_v31  ;;  %v4022_v33 = vpop.f32.mrb[21].mxu0  ;;  %v4592_v31 = vld [vmem:[%s6021_s8 + $0xb8] sm:$0xff]  }
 0x70a   : > { %v2420_v34 = vpop.f32.mrb[22].mxu0  ;;  %v4596_v33 = vld [vmem:[#allocation14 + $0x18] sm:$0xff]  }
 0x70b   : > { %v4023_v35 = vpop.f32.mrb[23].mxu0  ;;  %4041 = vmatmul.mubr.bf16.vlgmr.msra.gmra.mrb[16].mxu0 %v2423_v32  ;;  %v2999_v34 = vld [vmem:[#allocation13] sm:$0x3] }
 0x70c   : > { %4046 = vmatprep.mubr.msk.bf16.mxu0 %vm4932_vm0, %v4931_v0  ;;  %v3003_v35 = vrot.slane %v2999_v34, %v5288_v1  ;;  %v3008_v36 = vrot.slane %v2999_v34, %v5295_v4  ;;  %v4599_v1 = vld [vmem:[#allocation14 + $0x30] sm:$0xff]   ;;  %v4600_v4 = vld [vmem:[#allocation14 + $0x38] sm:$0xff]  }
 0x7de   : > { %v2523_v23 = vpop.f32.mrb[16].mxu0 }
 0x7df   : > { %v2535_v39 = vmul.f32 %v2534_v37, %v2523_v23  ;;  %v4042_v13 = vpop.f32.mrb[17].mxu0 }
 0x7e0   : > { %v2526_v40 = vpop.f32.mrb[18].mxu0 }
 0x7e1   : > { %v2540_v41 = vadd.f32 %v2539_v38, %v2535_v39  ;;  %v4043_v42 = vpop.f32.mrb[19].mxu0 }
 0x7e3   : > { %v2541_v43 = vadd.f32 %v2540_v41, %v5634_v48  ;;  %v2609_v48 = vld [vmem:[#allocation11 + $0x2] sm:$0x3]  ;;  %v4597_v41 = vld [vmem:[#allocation14 + $0x20] sm:$0xff]  }
 0x7e5   : > { %v2542_v44 = vmax.f32 %v2541_v43, 0.0  ;;  %v4598_v43 = vld [vmem:[#allocation14 + $0x28] sm:$0xff]  }
 0x7e7   : > { %v2543_v45 = vpack.c.bf16 %v2542_v44, %v2542_v44  ;;  %v4601_v44 = vld [vmem:[#allocation14 + $0x40] sm:$0xff]  }
 0x7e9   : > { %v2549_v46 = vsel %vm2078_vm4, %v2543_v45, 0 }
 0x7ea   : > { %4045 = vmatpush3.bf16.msra.mxu0 %v2549_v46  ;;  %4097 = vmatpush3.bf16.msra.mxu1 %v2549_v46 }
 0x7eb   : > { %4050 = vmatprep.subr.bf16.mxu0 %v4931_v0  ;;  %4122 = vmatprep.subr.bf16.mxu1 %v4931_v0 }
 0x7ed   : > { %4047 = vmatmul.mubr.msk.bf16.vlgmr.msra.gmra.mrb[24].mxu0 %vm2074_vm5, %v2544_v47  ;;  %4099 = vmatmul.mubr.msk.bf16.vlgmr.msra.gmra.mrb[24].mxu1 %vm2074_vm5, %v2848_v3  ;;  %v4603_v47 = vld [vmem:[#allocation14 + $0x50] sm:$0xff]   ;;  %v4604_v3 = vld [vmem:[#allocation14 + $0x58] sm:$0xff]  }
 0x7ee   : > { %4051 = vmatpush3.bf16.msra.mxu0 %v2549_v46  ;;  %4052 = vmatprep.mubr.msk.bf16.mxu0 %vm4932_vm0, %v4931_v0  ;;  %v4602_v46 = vld [vmem:[#allocation14 + $0x48] sm:$0xff]  }
 0x7ef   : > { %4056 = vmatprep.subr.bf16.mxu0 %v4931_v0  ;;  %4130 = vmatprep.mubr.msk.bf16.mxu1 %vm4932_vm0, %v4931_v0 }
 0x7f0   : > { %4123 = vmatpush3.bf16.msra.mxu1 %v4593_v55 }
 0x7f1   : > { %4124 = vmatprep.subr.bf16.mxu1 %v4931_v0 }
 0x7f4   : > { %4125 = vmatpush3.bf16.msra.mxu1 %v4594_v56 }
 0x7f5   : > { %4053 = vmatmul.mubr.msk.bf16.vlgmr.msra.gmra.mrb[28].mxu0 %vm2074_vm5, %v2609_v48  ;;  %4126 = vmatprep.subr.bf16.mxu1 %v4931_v0  ;;  %v4605_v48 = vld [vmem:[#allocation14 + $0x60] sm:$0xff]  }
 0x7f6   : > { %4057 = vmatpush3.bf16.msra.mxu0 %v4569_v49  ;;  %4072 = vmatprep.mubr.msk.bf16.mxu0 %vm4932_vm0, %v4931_v0 }
 0x7f7   : > { %4058 = vmatprep.subr.bf16.mxu0 %v4931_v0 }
 0x7f8   : > { %4127 = vmatpush3.bf16.msra.mxu1 %v4595_v57 }
 0x7f9   : > { %4128 = vmatprep.subr.bf16.mxu1 %v4931_v0 }
 0x7fa   : > { %4059 = vmatpush3.bf16.msra.mxu0 %v4570_v63  ;;  %v4606_v63 = vld [vmem:[#allocation14 + $0x68] sm:$0xff]  }
 0x7fb   : > { %4060 = vmatprep.subr.bf16.mxu0 %v4931_v0 }
 0x7fc   : > { %4129 = vmatpush3.bf16.msra.mxu1 %v4596_v33 }
 0x7fd   : > { %4134 = vmatprep.subr.bf16.mxu1 %v4931_v0 }
 0x7fe   : > { %4061 = vmatpush3.bf16.msra.mxu0 %v4571_v5  ;;  %v4607_v5 = vld [vmem:[#allocation14 + $0x70] sm:$0xff]  }
 0x7ff   : > { %4062 = vmatprep.subr.bf16.mxu0 %v4931_v0 }
 0x802   : > { %4063 = vmatpush3.bf16.msra.mxu0 %v4572_v50  ;;  %v4608_v50 = vld [vmem:[#allocation14 + $0x78] sm:$0xff]  }
 0x803   : > { %4064 = vmatprep.subr.bf16.mxu0 %v4931_v0 }
 0x806   : > { %4065 = vmatpush3.bf16.msra.mxu0 %v4573_v51 }
 0x807   : > { %4066 = vmatprep.subr.bf16.mxu0 %v4931_v0 }
 0x80a   : > { %4067 = vmatpush3.bf16.msra.mxu0 %v4574_v52  ;;  %v3010_v52 = vld [vmem:[%s6023_s28] sm:$0x1] }
 0x80b   : > { %4068 = vmatprep.subr.bf16.mxu0 %v4931_v0 }
 0x80e   : > { %4069 = vmatpush3.bf16.msra.mxu0 %v4575_v53 }
 0x80f   : > { %4070 = vmatprep.subr.bf16.mxu0 %v4931_v0 }
 0x812   : > { %4071 = vmatpush3.bf16.msra.mxu0 %v4576_v54 }
 0x813   : > { %4076 = vmatprep.subr.bf16.mxu0 %v4931_v0 }
 0x8c0   : > { %v2585_v58 = vpop.f32.mrb[24].mxu0  ;;  %v5807_v59 = vpop.f32.mrb[24].mxu1 }
 0x8c1   : > { %v4048_v60 = vpop.f32.mrb[25].mxu0  ;;  %v4100_v61 = vpop.f32.mrb[25].mxu1  ;;  %v2591_v24 = vpack.c.bf16 %v2585_v58, %v2585_v58  ;;  %v2892_v32 = vpack.c.bf16 %v5807_v59, %v5807_v59 }
 0x8c2   : > { %v2588_v62 = vpop.f32.mrb[26].mxu0  ;;  %v2889_v2 = vpop.f32.mrb[26].mxu1 }
 0x8c3   : > { %v4049_v6 = vpop.f32.mrb[27].mxu0  ;;  %v4101_v7 = vpop.f32.mrb[27].mxu1 }
 0x8c8   : > { %v2647_v8 = vpop.f32.mrb[28].mxu0 }
 0x8c9   : > { %v2653_v10 = vpack.c.bf16 %v2647_v8, %v2647_v8  ;;  %v4054_v11 = vpop.f32.mrb[29].mxu0 }
 0x8ca   : > { %v2650_v12 = vpop.f32.mrb[30].mxu0 }
 0x8cb   : > { %4073 = vmatmul.mubr.bf16.vlgmr.msra.gmra.mrb[32].mxu0 %v2653_v10  ;;  %v4055_v14 = vpop.f32.mrb[31].mxu0 }
 0x8cc   : > { %4077 = vmatpush3.bf16.msra.mxu0 %v4577_v9  ;;  %4092 = vmatprep.mubr.msk.bf16.mxu0 %vm4932_vm0, %v4931_v0 }
 0x8cd   : > { %4078 = vmatprep.subr.bf16.mxu0 %v4931_v0 }
 0x8d0   : > { %4079 = vmatpush3.bf16.msra.mxu0 %v4578_v15 }
 0x8d1   : > { %4080 = vmatprep.subr.bf16.mxu0 %v4931_v0 }
 0x8d4   : > { %4081 = vmatpush3.bf16.msra.mxu0 %v4579_v16 }
 0x8d5   : > { %4082 = vmatprep.subr.bf16.mxu0 %v4931_v0 }
 0x8d8   : > { %4083 = vmatpush3.bf16.msra.mxu0 %v4580_v17 }
 0x8d9   : > { %4084 = vmatprep.subr.bf16.mxu0 %v4931_v0 }
 0x8dc   : > { %4085 = vmatpush3.bf16.msra.mxu0 %v4581_v18 }
 0x8dd   : > { %4086 = vmatprep.subr.bf16.mxu0 %v4931_v0 }
 0x8e0   : > { %4087 = vmatpush3.bf16.msra.mxu0 %v4582_v19 }
 0x8e1   : > { %4088 = vmatprep.subr.bf16.mxu0 %v4931_v0 }
 0x8e4   : > { %4089 = vmatpush3.bf16.msra.mxu0 %v4583_v20 }
 0x8e5   : > { %4090 = vmatprep.subr.bf16.mxu0 %v4931_v0 }
 0x8e8   : > { %4091 = vmatpush3.bf16.msra.mxu0 %v4584_v21 }
 0x8e9   : > { %4102 = vmatprep.subr.bf16.mxu0 %v4931_v0 }
 0x8eb   : > { %4093 = vmatmul.mubr.bf16.vlgmr.msra.gmra.mrb[32].mxu0 %v2591_v24 }
 0x8ec   : > { %4103 = vmatpush3.bf16.msra.mxu0 %v4585_v22  ;;  %4118 = vmatprep.mubr.msk.bf16.mxu0 %vm4932_vm0, %v4931_v0 }
 0x8ed   : > { %4104 = vmatprep.subr.bf16.mxu0 %v4931_v0 }
 0x8f0   : > { %4105 = vmatpush3.bf16.msra.mxu0 %v4586_v25 }
 0x8f1   : > { %4106 = vmatprep.subr.bf16.mxu0 %v4931_v0 }
 0x8f4   : > { %4107 = vmatpush3.bf16.msra.mxu0 %v4587_v26 }
 0x8f5   : > { %4108 = vmatprep.subr.bf16.mxu0 %v4931_v0 }
 0x8f8   : > { %4109 = vmatpush3.bf16.msra.mxu0 %v4588_v27 }
 0x8f9   : > { %4110 = vmatprep.subr.bf16.mxu0 %v4931_v0 }
 0x8fc   : > { %4111 = vmatpush3.bf16.msra.mxu0 %v4589_v28 }
 0x8fd   : > { %4112 = vmatprep.subr.bf16.mxu0 %v4931_v0 }
 0x900   : > { %4113 = vmatpush3.bf16.msra.mxu0 %v4590_v29 }
 0x901   : > { %4114 = vmatprep.subr.bf16.mxu0 %v4931_v0 }
 0x904   : > { %4115 = vmatpush3.bf16.msra.mxu0 %v4591_v30 }
 0x905   : > { %4116 = vmatprep.subr.bf16.mxu0 %v4931_v0 }
 0x908   : > { %4117 = vmatpush3.bf16.msra.mxu0 %v4592_v31 }
 0x90b   : > { %4119 = vmatmul.mubr.bf16.vlgmr.msra.gmra.mrb[32].mxu0 %v2892_v32 }
 0x9de   : > { %v2992_v37 = vpop.f32.mrb[32].mxu0 }
 0x9df   : > { %v3004_v38 = vmul.f32 %v3003_v35, %v2992_v37  ;;  %v4120_v23 = vpop.f32.mrb[33].mxu0 }
 0x9e0   : > { %v2995_v39 = vpop.f32.mrb[34].mxu0 }
 0x9e1   : > { %v3009_v13 = vadd.f32 %v3008_v36, %v3004_v38  ;;  %v4121_v40 = vpop.f32.mrb[35].mxu0 }
 0x9e3   : > { %v3011_v42 = vpack.c.bf16 %v3009_v13, %v3009_v13 }
 0x9e5   : > { %4131 = vmatmul.mubr.msk.bf16.vlgmr.msra.gmra.mrb[28].mxu1 %vm3044_vm6, %v3011_v42  ;;  %v3098_v45 = vshrl.u32 %v3011_v42, 16  ;;  %v3178_v49 = vrot.slane %v3011_v42, 1 }
 0x9e6   : > { %4135 = vmatpush3.bf16.msra.mxu1 %v4597_v41  ;;  %4142 = vmatprep.mubr.msk.bf16.mxu1 %vm4932_vm0, %v4931_v0 }
 0x9e7   : > { %4136 = vmatprep.subr.bf16.mxu1 %v4931_v0  ;;  %v3256_v51 = vrot.slane %v3098_v45, 1 }
 0x9ea   : > { %4137 = vmatpush3.bf16.msra.mxu1 %v4598_v43 }
 0x9eb   : > { %4138 = vmatprep.subr.bf16.mxu1 %v4931_v0 }
 0x9ee   : > { %4139 = vmatpush3.bf16.msra.mxu1 %v4599_v1 }
 0x9ef   : > { %4140 = vmatprep.subr.bf16.mxu1 %v4931_v0 }
 0x9f2   : > { %4141 = vmatpush3.bf16.msra.mxu1 %v4600_v4 }
 0x9f3   : > { %4146 = vmatprep.subr.bf16.mxu1 %v4931_v0 }
 0x9f5   : > { %4143 = vmatmul.mubr.msk.bf16.vlgmr.msra.gmra.mrb[28].mxu1 %vm3044_vm6, %v3098_v45 }
 0x9f6   : > { %4147 = vmatpush3.bf16.msra.mxu1 %v4601_v44  ;;  %4154 = vmatprep.mubr.msk.bf16.mxu1 %vm4932_vm0, %v4931_v0 }
 0x9f7   : > { %4148 = vmatprep.subr.bf16.mxu1 %v4931_v0 }
 0x9fa   : > { %4149 = vmatpush3.bf16.msra.mxu1 %v4602_v46 }
 0x9fb   : > { %4150 = vmatprep.subr.bf16.mxu1 %v4931_v0 }
 0x9fe   : > { %4151 = vmatpush3.bf16.msra.mxu1 %v4603_v47 }
 0x9ff   : > { %4152 = vmatprep.subr.bf16.mxu1 %v4931_v0 }
 0xa02   : > { %4153 = vmatpush3.bf16.msra.mxu1 %v4604_v3 }
 0xa03   : > { %4158 = vmatprep.subr.bf16.mxu1 %v4931_v0 }
 0xa05   : > { %4155 = vmatmul.mubr.msk.bf16.vlgmr.msra.gmra.mrb[28].mxu1 %vm3044_vm6, %v3178_v49 }
 0xa06   : > { %4159 = vmatpush3.bf16.msra.mxu1 %v4605_v48  ;;  %4166 = vmatprep.mubr.msk.bf16.mxu1 %vm4932_vm0, %v4931_v0 }
 0xa07   : > { %4160 = vmatprep.subr.bf16.mxu1 %v4931_v0 }
 0xa0a   : > { %4161 = vmatpush3.bf16.msra.mxu1 %v4606_v63 }
 0xa0b   : > { %4162 = vmatprep.subr.bf16.mxu1 %v4931_v0 }
 0xa0e   : > { %4163 = vmatpush3.bf16.msra.mxu1 %v4607_v5 }
 0xa0f   : > { %4164 = vmatprep.subr.bf16.mxu1 %v4931_v0 }
 0xa12   : > { %4165 = vmatpush3.bf16.msra.mxu1 %v4608_v50 }
 0xa15   : > { %4167 = vmatmul.mubr.msk.bf16.vlgmr.msra.gmra.mrb[28].mxu1 %vm3044_vm6, %v3256_v51 }
 0xae8   : > { %v3318_v53 = vpop.f32.mrb[28].mxu1 }
 0xae9   : > { %v4170_v54 = vadd.f32 %v3318_v53, %v3010_v52  ;;  %v4168_v55 = vpop.f32.mrb[29].mxu1 }
 0xaea   : > { %v3321_v0 = vpop.f32.mrb[30].mxu1 }
 0xaeb   : > { %3325 = vst [vmem:[%s597_s27] sm:$0x1] %v4170_v54  ;;  %v4169_v56 = vpop.f32.mrb[31].mxu1 }
 0xaec   : > { %4846 = shalt.err (!%p4843_p13)
}
 0xaed   : > { %s4847_s15 = scalar_lea.hbm %s5910_s16, 16  ;;  %s4851_s29 = scalar_lea.hbm %s6025_s23, 32 }
 0xaee   : > { %p4848_p12 = scmp.ne.s32.totalorder %s5910_s16, %s4847_s15  ;;  %p4852_p3 = scmp.lt.u32.totalorder %s5910_s16, %s6025_s23 }
 0xaef   : > { %p4853_p4 = scmp.lt.u32.totalorder %s4851_s29, %s4847_s15  ;;  %p4855_p8 = scmp.lt.u32.totalorder %s4847_s15, %s5910_s16 }
 0xaf0   : > { %p4849_p1 = pnand %p4848_p12, %p6026_p11 }
 0xaf1   : > { %p4854_p7 = por %p4853_p4, %p4852_p3 }
 0xaf2   : > { %p4850_p2 = pneg %p4849_p1 }
 0xaf3   : > { %p4856_p5 = por %p4855_p8, %p4854_p7 }
 0xaf5   : > { %p4857_p0 = pnand %p4856_p5, %p4850_p2 }
 0xaf7   : > { %4860 = shalt.err (!%p4857_p0)
}
 0xaf8   : > { %4247 = dma.vmem_to_hbm [thread:$0]  (%p6026_p11), %s5912_s17, 16, %s5910_s16, %s3327_s19  }
 0xaf9 PF: > { %s6027_s27 = sld [smem:[#allocation26_spill]]  ;;  %s6028_s21 = sld [smem:[#allocation23_spill]] }
 0xafa   : > { %s6029_s30 = sld [smem:[#allocation30_spill]] }
 0xaff   : > { %p4294_p6 = scmp.ge.s32.totalorder %s6027_s27, 2  ;;  %s3351_s22 = sand.u32 1, %s6028_s21  }
 0xb00   : > { %p6030_p9 = scmp.ne.s32.totalorder %s6029_s30, 0  ;;  %s3352_s26 = scalar_lea.sflag [#allocation4], %s3351_s22 }
 0xb02   : > { %p4275_p10 = pnand %p4294_p6, %p6030_p9 }
 0xb04   : > { %4898 = dma.done.wait (!%p4275_p10), %s3352_s26, 16  }
 0xb05   : > { %4900 = vsyncadd (!%p4275_p10), %s3352_s26, 4294967280  ;;  %s6031_s21 = sld [smem:[#allocation27_spill]]  ;;  %s6032_s18 = sld [smem:[#allocation24_spill]] }
 0xb06   : > { %s6033_s19 = sld [smem:[#allocation25_spill]]  ;;  %s6034_s20 = sld [smem:[#allocation28_spill]] }
 0xb0b   : > { %p30_p13 = scmp.ge.s32.totalorder %s6031_s21, 4  }
 0xb0d   :  { %32 = sbr.rel (!%p30_p13) target bundleno = 14 (0xe), region = 167 }
 0xb14   :  { %3356 = vsyncpa [#allocation3], 1 }
 0xb15   :  { %3358 = vsyncpa [#allocation3 + $0x1], 1 }
 0xb16   :  { %3359 = vsyncpa [#allocation6], 1 }
 0xb17   :  { %3360 = vsyncpa [#allocation9], 1 }
 0xb18   :  { %3361 = vsyncpa [#allocation12], 1 }
 0xb19   :  { %3362 = vsyncpa [#allocation15], 1 }
 0xb1a   :  { %3363 = vsyncpa [#allocation4], 1 }
 0xb1b   :  { %3365 = vsyncpa [#allocation4 + $0x1], 1 }

</bundles_post_ra>
